<compile_context>
chip_gen: v7x
topology: tpu7x:2x2x1
jax: 0.10.0
libtpu: 0.0.40
codegen_flags: <defaults>
</compile_context>

<pallas_src>
import functools

import jax
import jax.numpy as jnp
from jax.experimental import pallas as pl
from jax.experimental.pallas import tpu as pltpu


# ----------------------------- helpers ------------------------------------- #

def _round_up(x, m):
    return ((x + m - 1) // m) * m


def _pad2d(a, rows, cols):
    r, c = a.shape
    if r == rows and c == cols:
        return a
    return jnp.pad(a, ((0, rows - r), (0, cols - c)))


def _choose_tm(B, cap=512):
    """Batch tile that minimizes zero-padding waste (8-row granularity)."""
    B8 = _round_up(B, 8)
    if B8 <= cap:
        return B8                       # single i-tile, at most 7 padded rows
    best_tm, best_waste = 8, B8
    for cand in (512, 256, 128, 64, 32, 16, 8):
        if cand > cap:
            continue
        waste = _round_up(B, cand) - B
        if waste <= max(B // 16, 32):   # accept <~6% padding, prefer big tiles
            return cand
        if waste < best_waste:
            best_tm, best_waste = cand, waste
    return best_tm


# ----------------------------- kernels ------------------------------------- #
# Fused (single contraction step) kernels: dot + bias (+ mix) + ReLU straight
# into o_ref, no accumulator scratch.

def _fused_kernel(x_ref, wt_ref, b_ref, o_ref):
    out = jnp.dot(x_ref[...], wt_ref[...], preferred_element_type=jnp.float32)
    out = out + b_ref[...]
    o_ref[...] = jnp.maximum(out, 0.0).astype(o_ref.dtype)


def _fused_mix_kernel(x_ref, wt_ref, b_ref, pos_ref, o_ref, *, lin_mix):
    vis = jnp.dot(x_ref[...], wt_ref[...], preferred_element_type=jnp.float32)
    vis = vis + b_ref[...]
    pos = pos_ref[...]
    out = vis + pos if lin_mix else vis * jnp.abs(pos)
    o_ref[...] = jnp.maximum(out, 0.0).astype(o_ref.dtype)


# Tiled (multi k-step) kernels: f32 VMEM accumulator, init at k==0, epilogue at
# k==last.

def _tiled_kernel(x_ref, wt_ref, b_ref, o_ref, acc_ref):
    k = pl.program_id(2)

    @pl.when(k == 0)
    def _():
        acc_ref[...] = jnp.zeros_like(acc_ref)

    acc_ref[...] += jnp.dot(x_ref[...], wt_ref[...],
                            preferred_element_type=jnp.float32)

    @pl.when(k == pl.num_programs(2) - 1)
    def _():
        out = acc_ref[...] + b_ref[...]
        o_ref[...] = jnp.maximum(out, 0.0).astype(o_ref.dtype)


def _tiled_mix_kernel(x_ref, wt_ref, b_ref, pos_ref, o_ref, acc_ref, *, lin_mix):
    k = pl.program_id(2)

    @pl.when(k == 0)
    def _():
        acc_ref[...] = jnp.zeros_like(acc_ref)

    acc_ref[...] += jnp.dot(x_ref[...], wt_ref[...],
                            preferred_element_type=jnp.float32)

    @pl.when(k == pl.num_programs(2) - 1)
    def _():
        vis = acc_ref[...] + b_ref[...]
        pos = pos_ref[...]
        out = vis + pos if lin_mix else vis * jnp.abs(pos)
        o_ref[...] = jnp.maximum(out, 0.0).astype(o_ref.dtype)


# ----------------------------- wrapper -------------------------------------- #

def linvis_forward(x, W, b, move_input=None, Wm=None, bm=None, lin_mix=False,
                   *, compute_dtype=jnp.bfloat16, out_dtype=None,
                   resident_vmem_budget=20 * 1024 * 1024,
                   force_tiled=False, tiled_tn=512, tiled_tk=None):
    """LinVisNetwork.forward.

    x:  (B, in_features)           W:  (N_cells, in_features)   b:  (N_cells,)
    move_input: (B, move_features) or None
    Wm: (N_cells, move_features)   bm: (N_cells,)
    compute_dtype: dtype for the MXU operands (default bf16); accumulation is
                   always f32.  Pass jnp.float32 (or None) for full precision.
    out_dtype:     output dtype (default: x.dtype).
    """
    B, F = x.shape
    N, Fw = W.shape
    assert Fw == F, "weight in_features mismatch"
    out_dtype = x.dtype if out_dtype is None else out_dtype
    out_item = jnp.dtype(out_dtype).itemsize

    has_move = move_input is not None
    if has_move:
        assert Wm is not None and bm is not None
        # Tiny K (~move_features) matmul hoisted to XLA, kept f32 for accuracy.
        pos = (move_input.astype(jnp.float32) @ Wm.astype(jnp.float32).T
               + bm.astype(jnp.float32))

    cdt = x.dtype if compute_dtype is None else compute_dtype
    xc = x.astype(cdt)
    Wt = W.astype(cdt).T                 # (F, N): canonical (tm,tk)x(tk,tn) dot
    item = jnp.dtype(cdt).itemsize

    N_pad0 = _round_up(N, 128)
    F_pad0 = _round_up(F, 128)
    wt_bytes = F_pad0 * N_pad0 * item

    # --- choose batch tile & path -------------------------------------------
    tm0 = _choose_tm(B)

    def _resident_est(tm_):
        x_t = tm_ * F_pad0 * item
        o_t = tm_ * N_pad0 * out_item
        p_t = tm_ * N_pad0 * 4 if has_move else 0
        return wt_bytes + 2 * (x_t + o_t + p_t) + 2 * N_pad0 * 4

    tm_res = tm0
    est = _resident_est(tm_res)
    while est > resident_vmem_budget and tm_res > 64:
        tm_res = max(64, _round_up(tm_res // 2, 8))
        est = _resident_est(tm_res)
    use_resident = (not force_tiled) and est <= resident_vmem_budget

    if use_resident:
        tm = tm_res
        N_pad, F_pad = N_pad0, F_pad0
        tn, tk = N_pad, F_pad
        B_pad = _round_up(B, tm)
        grid = (B_pad // tm,)
    else:
        tm = tm0
        tn = _round_up(min(tiled_tn, N_pad0), 128)
        tk_default = tiled_tk if tiled_tk is not None else (2048 if item <= 2 else 1024)
        tk = _round_up(min(tk_default, F_pad0), 128)
        N_pad = _round_up(N, tn)
        F_pad = _round_up(F, tk)
        B_pad = _round_up(B, tm)
        grid = (B_pad // tm, N_pad // tn, F_pad // tk)

    # --- pad operands (zeros are harmless; padded output is sliced off) ------
    x_p = _pad2d(xc, B_pad, F_pad)
    Wt_p = _pad2d(Wt, F_pad, N_pad)
    b_p = _pad2d(b.reshape(1, N).astype(jnp.float32), 1, N_pad)
    if has_move:
        pos_p = _pad2d(pos, B_pad, N_pad)

    flops = 2 * B_pad * F_pad * N_pad

    if use_resident:
        # 1-D grid over B: W/b (and per-tile pos) VMEM-resident, x streamed once.
        in_specs = [
            pl.BlockSpec((tm, F_pad), lambda i: (i, 0)),
            pl.BlockSpec((F_pad, N_pad), lambda i: (0, 0)),
            pl.BlockSpec((1, N_pad), lambda i: (0, 0)),
        ]
        args = [x_p, Wt_p, b_p]
        if has_move:
            in_specs.append(pl.BlockSpec((tm, N_pad), lambda i: (i, 0)))
            args.append(pos_p)
            kernel = functools.partial(_fused_mix_kernel, lin_mix=bool(lin_mix))
        else:
            kernel = _fused_kernel
        o_spec = pl.BlockSpec((tm, N_pad), lambda i: (i, 0))
        scratch = []
        semantics = ("parallel",)
        bytes_accessed = (B_pad * F_pad * item + wt_bytes + N_pad * 4
                          + (B_pad * N_pad * 4 if has_move else 0)
                          + B_pad * N_pad * out_item)
        vmem_need = est
    else:
        gi, gj, gk = grid
        single_k = (gk == 1)
        if single_k:
            # Single reduction step: fused kernel, 2-D grid, no accumulator.
            grid = (gi, gj)
            x_spec = pl.BlockSpec((tm, tk), lambda i, j: (i, 0))
            w_spec = pl.BlockSpec((tk, tn), lambda i, j: (0, j))
            b_spec = pl.BlockSpec((1, tn), lambda i, j: (0, j))
            pos_spec = pl.BlockSpec((tm, tn), lambda i, j: (i, j))
            o_spec = pl.BlockSpec((tm, tn), lambda i, j: (i, j))
            scratch = []
            semantics = ("parallel", "parallel")
            kernel = (functools.partial(_fused_mix_kernel, lin_mix=bool(lin_mix))
                      if has_move else _fused_kernel)
        else:
            x_spec = pl.BlockSpec((tm, tk), lambda i, j, k: (i, k))
            w_spec = pl.BlockSpec((tk, tn), lambda i, j, k: (k, j))
            b_spec = pl.BlockSpec((1, tn), lambda i, j, k: (0, j))
            pos_spec = pl.BlockSpec((tm, tn), lambda i, j, k: (i, j))
            o_spec = pl.BlockSpec((tm, tn), lambda i, j, k: (i, j))
            scratch = [pltpu.VMEM((tm, tn), jnp.float32)]
            semantics = ("parallel", "parallel", "arbitrary")
            kernel = (functools.partial(_tiled_mix_kernel, lin_mix=bool(lin_mix))
                      if has_move else _tiled_kernel)
        in_specs = [x_spec, w_spec, b_spec]
        args = [x_p, Wt_p, b_p]
        if has_move:
            in_specs.append(pos_spec)
            args.append(pos_p)
        # Grid-aware: x is re-fetched per j-tile, W per i-tile.
        bytes_accessed = (gj * B_pad * F_pad * item
                          + gi * F_pad * N_pad * item
                          + N_pad * 4
                          + (B_pad * N_pad * 4 if has_move else 0)
                          + B_pad * N_pad * out_item)
        vmem_need = (2 * (tm * tk * item + tk * tn * item + tn * 4
                          + tm * tn * out_item
                          + (tm * tn * 4 if has_move else 0))
                     + (tm * tn * 4 if scratch else 0))

    compiler_params = pltpu.CompilerParams(
        dimension_semantics=semantics,
        vmem_limit_bytes=int(min(max(32 << 20, 2 * vmem_need), 48 << 20)))

    out = pl.pallas_call(
        kernel,
        out_shape=jax.ShapeDtypeStruct((B_pad, N_pad), out_dtype),
        grid_spec=pltpu.PrefetchScalarGridSpec(
            num_scalar_prefetch=0,
            grid=grid,
            in_specs=in_specs,
            out_specs=o_spec,
            scratch_shapes=scratch),
        compiler_params=compiler_params,
        cost_estimate=pl.CostEstimate(
            flops=int(flops), transcendentals=0,
            bytes_accessed=int(bytes_accessed)),
    )(*args)
    return out[:B, :N]


# ----------------------------- reference ------------------------------------ #

def linvis_reference(x, W, b, move_input=None, Wm=None, bm=None, lin_mix=False):
    out = x @ W.T + b
    if move_input is not None:
        pos = move_input @ Wm.T + bm
        out = (out + pos) if lin_mix else (out * jnp.abs(pos))
    return jnp.maximum(out, 0.0)


# ------------------------------- main ---------------------------------------- #

if __name__ == "__main__":
    key = jax.random.PRNGKey(0)
    # Small shapes consistent with the module; B and N_cells deliberately not
    # tile-aligned to exercise the minimal-padding logic.
    B, in_features, N_cells, move_features = 260, 768, 200, 4

    k_x, k_w, k_b, k_m, k_wm = jax.random.split(key, 5)

    x = jax.random.normal(k_x, (B, in_features), dtype=jnp.float32)
    move_input = jax.random.normal(k_m, (B, move_features), dtype=jnp.float32)

    # Cell_NN weights: uniform(-1e-6, 1e-6); bias: default nn.Linear init.
    W = jax.random.uniform(k_w, (N_cells, in_features),
                           minval=-1e-6, maxval=1e-6, dtype=jnp.float32)
    bound = 1.0 / float(jnp.sqrt(jnp.float32(in_features)))
    b = jax.random.uniform(k_b, (N_cells,), minval=-bound, maxval=bound,
                           dtype=jnp.float32)

    # posNN weights: uniform(-1e-6, 1e-6); bias ones (LinMix=False) / zeros (True).
    Wm = jax.random.uniform(k_wm, (N_cells, move_features),
                            minval=-1e-6, maxval=1e-6, dtype=jnp.float32)
    bm_ones = jnp.ones((N_cells,), dtype=jnp.float32)
    bm_zeros = jnp.zeros((N_cells,), dtype=jnp.float32)

    ref_base = linvis_reference(x, W, b)
    ref_mult = linvis_reference(x, W, b, move_input, Wm, bm_ones, lin_mix=False)
    ref_add = linvis_reference(x, W, b, move_input, Wm, bm_zeros, lin_mix=True)

    # --- resident-W path, f32 operands (tight tolerance) ---------------------
    out = jax.block_until_ready(linvis_forward(x, W, b,
                                               compute_dtype=jnp.float32))
    assert out.shape == (B, N_cells)
    assert jnp.allclose(out, ref_base, atol=1e-6, rtol=1e-5), "base f32 mismatch"

    out_a = jax.block_until_ready(
        linvis_forward(x, W, b, move_input, Wm, bm_zeros, lin_mix=True,
                       compute_dtype=jnp.float32))
    assert jnp.allclose(out_a, ref_add, atol=1e-6, rtol=1e-5), "add-mix f32 mismatch"

    # --- resident-W path, default bf16 operands (loose tolerance) ------------
    out_b = jax.block_until_ready(linvis_forward(x, W, b))
    assert jnp.allclose(out_b, ref_base, atol=1e-3, rtol=2e-2), "base bf16 mismatch"

    out_m = jax.block_until_ready(
        linvis_forward(x, W, b, move_input, Wm, bm_ones, lin_mix=False))
    assert jnp.allclose(out_m, ref_mult, atol=1e-3, rtol=2e-2), "mult bf16 mismatch"

    # --- tiled fallback, single-k specialization (2-D grid, fused kernel) ----
    out_t1 = jax.block_until_ready(
        linvis_forward(x, W, b, move_input, Wm, bm_ones, lin_mix=False,
                       compute_dtype=jnp.float32, force_tiled=True))
    assert jnp.allclose(out_t1, ref_mult, atol=1e-6, rtol=1e-5), "tiled 1k mismatch"

    # --- tiled fallback, multi-k reduction (3-D grid, accumulator) -----------
    out_t2 = jax.block_until_ready(
        linvis_forward(x, W, b, move_input, Wm, bm_zeros, lin_mix=True,
                       compute_dtype=jnp.float32, force_tiled=True,
                       tiled_tn=128, tiled_tk=256))
    assert jnp.allclose(out_t2, ref_add, atol=1e-6, rtol=1e-5), "tiled 3k mismatch"

    print("KERNEL_OK")
</pallas_src>

<mosaic_0001>
module attributes {stable_mosaic.version = 11 : i64} {
  func.func @_fused_kernel(%arg0: i32, %arg1: memref<264x768xf32, #tpu.memory_space<vmem>>, %arg2: memref<768x256xf32, #tpu.memory_space<vmem>>, %arg3: memref<1x256xf32, #tpu.memory_space<vmem>>, %arg4: memref<264x256xf32, #tpu.memory_space<vmem>>) attributes {dimension_semantics = [#tpu.dimension_semantics<parallel>], iteration_bounds = array<i64: 1>, scalar_prefetch = 0 : i64, scratch_operands = 0 : i64, tpu.core_type = #tpu.core_type<tc>, window_params = [{transform_indices = @transform_0, window_bounds = array<i64: 264, 768>}, {pipeline_mode = #tpu.pipeline_mode<synchronous>, transform_indices = @transform_1, window_bounds = array<i64: 768, 256>}, {pipeline_mode = #tpu.pipeline_mode<synchronous>, transform_indices = @transform_2, window_bounds = array<i64: 1, 256>}, {transform_indices = @transform_3, window_bounds = array<i64: 264, 256>}]} {
    %c0 = arith.constant 0 : index
    %c0_0 = arith.constant 0 : index
    %0 = vector.load %arg1[%c0, %c0_0] : memref<264x768xf32, #tpu.memory_space<vmem>>, vector<264x768xf32>
    %c0_1 = arith.constant 0 : index
    %c0_2 = arith.constant 0 : index
    %1 = vector.load %arg2[%c0_1, %c0_2] : memref<768x256xf32, #tpu.memory_space<vmem>>, vector<768x256xf32>
    %cst = arith.constant dense<0.000000e+00> : vector<264x256xf32>
    %2 = tpu.matmul %0, %1, %cst {dimension_numbers = #tpu.dot_dimension_numbers<[1], [0], [0], [1], [0, 0, 1, 1], [], []>} : vector<264x768xf32>, vector<768x256xf32>, vector<264x256xf32> -> vector<264x256xf32>
    %c0_3 = arith.constant 0 : index
    %c0_4 = arith.constant 0 : index
    %3 = vector.load %arg3[%c0_3, %c0_4] : memref<1x256xf32, #tpu.memory_space<vmem>>, vector<1x256xf32>
    %4 = vector.broadcast %3 : vector<1x256xf32> to vector<264x256xf32>
    %5 = arith.addf %2, %4 : vector<264x256xf32>
    %cst_5 = arith.constant 0.000000e+00 : f32
    %6 = vector.broadcast %cst_5 : f32 to vector<264x256xf32>
    %7 = arith.maximumf %5, %6 : vector<264x256xf32>
    %c0_6 = arith.constant 0 : index
    %c0_7 = arith.constant 0 : index
    %8 = vector.load %arg4[%c0_6, %c0_7] : memref<264x256xf32, #tpu.memory_space<vmem>>, vector<264x256xf32>
    tpu.vector_store %arg4[%c0_6, %c0_7], %7 {strides = array<i32>} : memref<264x256xf32, #tpu.memory_space<vmem>>, vector<264x256xf32>,
    return
  }
  func.func @transform_0(%arg0: i32) -> (i32, i32) {
    %c0_i32 = arith.constant 0 : i32
    %c0_i32_0 = arith.constant 0 : i32
    return %arg0, %c0_i32 : i32, i32
  }
  func.func @transform_1(%arg0: i32) -> (i32, i32) {
    %c0_i32 = arith.constant 0 : i32
    %c0_i32_0 = arith.constant 0 : i32
    %c0_i32_1 = arith.constant 0 : i32
    return %c0_i32, %c0_i32_0 : i32, i32
  }
  func.func @transform_2(%arg0: i32) -> (i32, i32) {
    %c0_i32 = arith.constant 0 : i32
    %c0_i32_0 = arith.constant 0 : i32
    %c0_i32_1 = arith.constant 0 : i32
    return %c0_i32, %c0_i32_0 : i32, i32
  }
  func.func @transform_3(%arg0: i32) -> (i32, i32) {
    %c0_i32 = arith.constant 0 : i32
    %c0_i32_0 = arith.constant 0 : i32
    return %arg0, %c0_i32 : i32, i32
  }
}

</mosaic_0001>

<bundles_post_ra>
// kernel: tpu_custom_call.1
= control target key start
LH: loop header
LB: loop body
LE: loop exit
PB: predicated region body
PF: predicated region fallthrough
CT: control target
= control target key end

     0   :  { %8 = vsyncpa [#allocation3], 0  ;;  %s2227_s0 = inlined_call_operand.hbm [shape: f32[264,768], index: 0, kind: input, shape index: {}]   ;;  %s2228_s1 = inlined_call_operand.hbm [shape: f32[768,256], index: 1, kind: input, shape index: {}]   ;;  %s2229_s2 = inlined_call_operand.vmem [shape: f32[1,256], index: 2, kind: input, shape index: {}]   ;;  %s2230_s3 = inlined_call_operand.hbm [shape: f32[264,256], index: 3, kind: output, shape index: {}]  }
   0x1   :  { %9 = vsyncpa [#allocation6], 0 }
   0x2   :  { %10 = vsyncpa [#allocation4], 0  ;;  %s1885_s12 = smov [#allocation2]   ;;  %s1813_s16 = scalar_lea.hbm %s2227_s0, 25344 }
   0x3   :  { %s16_s13 = sshll.u32 %s1885_s12, 4  ;;  %p1814_p0 = scmp.ne.s32.totalorder %s2227_s0, %s1813_s16  ;;  %s17_s13 = int_to_ptr.vmem [resolvable:$true] %s16_s13 }
   0x4   :  { %p1817_p1 = scmp.lt.u32.totalorder %s1813_s16, %s2227_s0 }
   0x6   :  { %p1819_p2 = pnand %p1817_p1, %p1814_p0 }
   0x8   :  { %1822 = shalt.err (!%p1819_p2)
}
   0x9   :  { %s1823_s21 = scalar_lea.vmem %s17_s13, 25344  ;;  %p1828_p4 = scmp.lt.s32.totalorder %s17_s13, %s17_s13 }
   0xa   :  { %p1824_p3 = scmp.ne.s32.totalorder %s17_s13, %s1823_s21  ;;  %p1829_p5 = scmp.lt.s32.totalorder %s1823_s21, %s1823_s21 }
   0xc   :  { %p1830_p6 = por %p1829_p5, %p1828_p4 }
   0xe   :  { %p1831_p7 = pnand %p1830_p6, %p1824_p3 }
  0x10   :  { %1834 = shalt.err (!%p1831_p7)
}
  0x11   :  { %s1886_s22 = smov 768   ;;  %s1887_s23 = smov 48  }
  0x12   :  { %22 = dma.hbm_to_vmem [thread:$0]  %s2227_s0, 25344, %s17_s13, [#allocation3], %s1886_s22, %s1886_s22, %s1887_s23  }
  0x13   :  { %s1888_s26 = smov [#allocation5]   ;;  %s1835_s30 = scalar_lea.hbm %s2228_s1, 24576 }
  0x14   :  { %s28_s27 = sshll.u32 %s1888_s26, 4  ;;  %p1836_p8 = scmp.ne.s32.totalorder %s2228_s1, %s1835_s30  ;;  %s29_s27 = int_to_ptr.vmem [resolvable:$true] %s28_s27 }
  0x15   :  { %p1839_p9 = scmp.lt.u32.totalorder %s1835_s30, %s2228_s1 }
  0x17   :  { %p1841_p10 = pnand %p1839_p9, %p1836_p8 }
  0x19   :  { %1844 = shalt.err (!%p1841_p10)
}
  0x1a   :  { %s1845_s8 = scalar_lea.vmem %s29_s27, 24576  ;;  %p1850_p12 = scmp.lt.s32.totalorder %s29_s27, %s29_s27 }
  0x1b   :  { %p1846_p11 = scmp.ne.s32.totalorder %s29_s27, %s1845_s8  ;;  %p1851_p13 = scmp.lt.s32.totalorder %s1845_s8, %s1845_s8 }
  0x1d   :  { %p1852_p0 = por %p1851_p13, %p1850_p12 }
  0x1f   :  { %p1853_p1 = pnand %p1852_p0, %p1846_p11 }
  0x21   :  { %1856 = shalt.err (!%p1853_p1)
}
  0x22   :  { %s1889_s0 = smov 256   ;;  %s1890_s9 = smov 16  }
  0x23   :  { %34 = dma.hbm_to_vmem [thread:$0]  %s2228_s1, 24576, %s29_s27, [#allocation6], %s1889_s0, %s1889_s0, %s1890_s9  }
  0x24   :  { %1879 = dma.done.wait [#allocation3], 25344  }
  0x25   :  { %1880 = vsyncadd [#allocation3], 4294941952 }
  0x26   :  { %1881 = dma.done.wait [#allocation6], 24576  }
  0x27   :  { %1882 = vsyncadd [#allocation6], 4294942720  ;;  %v242_v0 = vld [vmem:[#allocation5 + $0x8] sm:$0xff]  ;;  %v244_v1 = vld [vmem:[#allocation5 + $0x18] sm:$0xff] }
  0x28   :  { %v306_v2 = vld [vmem:[#allocation5 + $0x208] sm:$0xff]  ;;  %v1384_v3 = vpack.c.bf16 %v244_v1, %v242_v0  ;;  %v308_v4 = vld [vmem:[#allocation5 + $0x218] sm:$0xff]  ;;  %v241_v5 = vld [vmem:[#allocation5] sm:$0xff] }
  0x29   :  { %v243_v6 = vld [vmem:[#allocation5 + $0x10] sm:$0xff]  ;;  %v1939_v7 = vpack.c.bf16 %v308_v4, %v306_v2  ;;  %v305_v9 = vld [vmem:[#allocation5 + $0x200] sm:$0xff]  ;;  %v246_v11 = vld [vmem:[#allocation5 + $0x28] sm:$0xff] }
  0x2a   :  { %v1386_v8 = vpack.c.bf16 %v243_v6, %v241_v5  ;;  %v307_v10 = vld [vmem:[#allocation5 + $0x210] sm:$0xff]  ;;  %1385 = vmatprep.subr.bf16.mxu1 %v1384_v3  ;;  %v248_v13 = vld [vmem:[#allocation5 + $0x38] sm:$0xff]  ;;  %v310_v14 = vld [vmem:[#allocation5 + $0x228] sm:$0xff] }
  0x2b   :  { %v1941_v12 = vpack.c.bf16 %v307_v10, %v305_v9  ;;  %v312_v15 = vld [vmem:[#allocation5 + $0x238] sm:$0xff]  ;;  %1449 = vmatprep.subr.bf16.mxu0 %v1939_v7  ;;  %v1388_v16 = vpack.c.bf16 %v248_v13, %v246_v11  ;;  %v245_v18 = vld [vmem:[#allocation5 + $0x20] sm:$0xff]  ;;  %v247_v19 = vld [vmem:[#allocation5 + $0x30] sm:$0xff] }
  0x2c   :  { %1387 = vmatpush1.bf16.msra.mxu1 %v1386_v8  ;;  %v1944_v17 = vpack.c.bf16 %v312_v15, %v310_v14  ;;  %v309_v20 = vld [vmem:[#allocation5 + $0x220] sm:$0xff]  ;;  %v1390_v21 = vpack.c.bf16 %v247_v19, %v245_v18  ;;  %v311_v22 = vld [vmem:[#allocation5 + $0x230] sm:$0xff]  ;;  %v250_v23 = vld [vmem:[#allocation5 + $0x48] sm:$0xff] }
  0x2d   :  { %1451 = vmatpush1.bf16.msra.mxu0 %v1941_v12  ;;  %v252_v24 = vld [vmem:[#allocation5 + $0x58] sm:$0xff]  ;;  %1389 = vmatprep.subr.bf16.mxu1 %v1388_v16  ;;  %v1948_v25 = vpack.c.bf16 %v311_v22, %v309_v20  ;;  %v314_v27 = vld [vmem:[#allocation5 + $0x248] sm:$0xff]  ;;  %v249_v29 = vld [vmem:[#allocation5 + $0x40] sm:$0xff] }
  0x2e   :  { %1453 = vmatprep.subr.bf16.mxu0 %v1944_v17  ;;  %v1392_v26 = vpack.c.bf16 %v252_v24, %v250_v23  ;;  %v316_v28 = vld [vmem:[#allocation5 + $0x258] sm:$0xff]  ;;  %v251_v31 = vld [vmem:[#allocation5 + $0x50] sm:$0xff]  ;;  %v313_v32 = vld [vmem:[#allocation5 + $0x240] sm:$0xff] }
  0x2f   :  { %v1950_v30 = vpack.c.bf16 %v316_v28, %v314_v27  ;;  %v315_v33 = vld [vmem:[#allocation5 + $0x250] sm:$0xff]  ;;  %v1394_v34 = vpack.c.bf16 %v251_v31, %v249_v29  ;;  %v254_v35 = vld [vmem:[#allocation5 + $0x68] sm:$0xff]  ;;  %v256_v36 = vld [vmem:[#allocation5 + $0x78] sm:$0xff] }
  0x30   :  { %1391 = vmatpush1.bf16.msra.mxu1 %v1390_v21  ;;  %v318_v37 = vld [vmem:[#allocation5 + $0x268] sm:$0xff]  ;;  %v1953_v38 = vpack.c.bf16 %v315_v33, %v313_v32  ;;  %v1396_v39 = vpack.c.bf16 %v256_v36, %v254_v35  ;;  %v320_v40 = vld [vmem:[#allocation5 + $0x278] sm:$0xff]  ;;  %v253_v41 = vld [vmem:[#allocation5 + $0x60] sm:$0xff] }
  0x31   :  { %1455 = vmatpush1.bf16.msra.mxu0 %v1948_v25  ;;  %1393 = vmatprep.subr.bf16.mxu1 %v1392_v26  ;;  %v255_v42 = vld [vmem:[#allocation5 + $0x70] sm:$0xff]  ;;  %v1956_v43 = vpack.c.bf16 %v320_v40, %v318_v37  ;;  %v317_v44 = vld [vmem:[#allocation5 + $0x260] sm:$0xff]  ;;  %v258_v46 = vld [vmem:[#allocation5 + $0x88] sm:$0xff] }
  0x32   :  { %1457 = vmatprep.subr.bf16.mxu0 %v1950_v30  ;;  %v319_v45 = vld [vmem:[#allocation5 + $0x270] sm:$0xff]  ;;  %v260_v47 = vld [vmem:[#allocation5 + $0x98] sm:$0xff]  ;;  %v322_v48 = vld [vmem:[#allocation5 + $0x288] sm:$0xff]  ;;  %v1398_v50 = vpack.c.bf16 %v255_v42, %v253_v41 }
  0x33   :  { %v324_v49 = vld [vmem:[#allocation5 + $0x298] sm:$0xff]  ;;  %v1959_v51 = vpack.c.bf16 %v319_v45, %v317_v44  ;;  %v1400_v52 = vpack.c.bf16 %v260_v47, %v258_v46  ;;  %v257_v53 = vld [vmem:[#allocation5 + $0x80] sm:$0xff]  ;;  %v259_v54 = vld [vmem:[#allocation5 + $0x90] sm:$0xff] }
  0x34   :  { %1395 = vmatpush1.bf16.msra.mxu1 %v1394_v34  ;;  %v321_v55 = vld [vmem:[#allocation5 + $0x280] sm:$0xff]  ;;  %v1962_v56 = vpack.c.bf16 %v324_v49, %v322_v48  ;;  %v323_v57 = vld [vmem:[#allocation5 + $0x290] sm:$0xff]  ;;  %v262_v58 = vld [vmem:[#allocation5 + $0xa8] sm:$0xff]  ;;  %v1402_v62 = vpack.c.bf16 %v259_v54, %v257_v53 }
  0x35   :  { %1459 = vmatpush1.bf16.msra.mxu0 %v1953_v38  ;;  %1397 = vmatprep.subr.bf16.mxu1 %v1396_v39  ;;  %v264_v59 = vld [vmem:[#allocation5 + $0xb8] sm:$0xff]  ;;  %v326_v60 = vld [vmem:[#allocation5 + $0x2a8] sm:$0xff]  ;;  %v1965_v63 = vpack.c.bf16 %v323_v57, %v321_v55  ;;  %v261_v1 = vld [vmem:[#allocation5 + $0xa0] sm:$0xff] }
  0x36   :  { %1461 = vmatprep.subr.bf16.mxu0 %v1956_v43  ;;  %v328_v61 = vld [vmem:[#allocation5 + $0x2b8] sm:$0xff]  ;;  %v1404_v0 = vpack.c.bf16 %v264_v59, %v262_v58  ;;  %v263_v2 = vld [vmem:[#allocation5 + $0xb0] sm:$0xff]  ;;  %v325_v3 = vld [vmem:[#allocation5 + $0x2a0] sm:$0xff] }
  0x37   :  { %v1968_v4 = vpack.c.bf16 %v328_v61, %v326_v60  ;;  %v327_v5 = vld [vmem:[#allocation5 + $0x2b0] sm:$0xff]  ;;  %v266_v6 = vld [vmem:[#allocation5 + $0xc8] sm:$0xff]  ;;  %v268_v8 = vld [vmem:[#allocation5 + $0xd8] sm:$0xff]  ;;  %v1406_v11 = vpack.c.bf16 %v263_v2, %v261_v1 }
  0x38   :  { %1399 = vmatpush1.bf16.msra.mxu1 %v1398_v50  ;;  %v330_v9 = vld [vmem:[#allocation5 + $0x2c8] sm:$0xff]  ;;  %v332_v10 = vld [vmem:[#allocation5 + $0x2d8] sm:$0xff]  ;;  %v1971_v13 = vpack.c.bf16 %v327_v5, %v325_v3  ;;  %v1408_v14 = vpack.c.bf16 %v268_v8, %v266_v6  ;;  %v265_v15 = vld [vmem:[#allocation5 + $0xc0] sm:$0xff] }
  0x39   :  { %1463 = vmatpush1.bf16.msra.mxu0 %v1959_v51  ;;  %1401 = vmatprep.subr.bf16.mxu1 %v1400_v52  ;;  %v267_v16 = vld [vmem:[#allocation5 + $0xd0] sm:$0xff]  ;;  %v329_v18 = vld [vmem:[#allocation5 + $0x2c0] sm:$0xff]  ;;  %v1974_v19 = vpack.c.bf16 %v332_v10, %v330_v9  ;;  %v270_v21 = vld [vmem:[#allocation5 + $0xe8] sm:$0xff] }
  0x3a   :  { %1465 = vmatprep.subr.bf16.mxu0 %v1962_v56  ;;  %v331_v20 = vld [vmem:[#allocation5 + $0x2d0] sm:$0xff]  ;;  %v272_v22 = vld [vmem:[#allocation5 + $0xf8] sm:$0xff]  ;;  %v334_v23 = vld [vmem:[#allocation5 + $0x2e8] sm:$0xff]  ;;  %v1410_v26 = vpack.c.bf16 %v267_v16, %v265_v15 }
  0x3b   :  { %v336_v24 = vld [vmem:[#allocation5 + $0x2f8] sm:$0xff]  ;;  %v1977_v27 = vpack.c.bf16 %v331_v20, %v329_v18  ;;  %v1412_v28 = vpack.c.bf16 %v272_v22, %v270_v21  ;;  %v269_v29 = vld [vmem:[#allocation5 + $0xe0] sm:$0xff]  ;;  %v271_v31 = vld [vmem:[#allocation5 + $0xf0] sm:$0xff] }
  0x3c   :  { %1403 = vmatpush1.bf16.msra.mxu1 %v1402_v62  ;;  %v333_v32 = vld [vmem:[#allocation5 + $0x2e0] sm:$0xff]  ;;  %v1980_v33 = vpack.c.bf16 %v336_v24, %v334_v23  ;;  %v335_v34 = vld [vmem:[#allocation5 + $0x2f0] sm:$0xff]  ;;  %v274_v35 = vld [vmem:[#allocation5 + $0x108] sm:$0xff]  ;;  %v1414_v40 = vpack.c.bf16 %v271_v31, %v269_v29 }
  0x3d   :  { %1467 = vmatpush1.bf16.msra.mxu0 %v1965_v63  ;;  %1405 = vmatprep.subr.bf16.mxu1 %v1404_v0  ;;  %v276_v36 = vld [vmem:[#allocation5 + $0x118] sm:$0xff]  ;;  %v338_v37 = vld [vmem:[#allocation5 + $0x308] sm:$0xff]  ;;  %v1983_v41 = vpack.c.bf16 %v335_v34, %v333_v32  ;;  %v273_v44 = vld [vmem:[#allocation5 + $0x100] sm:$0xff] }
  0x3e   :  { %1469 = vmatprep.subr.bf16.mxu0 %v1968_v4  ;;  %v340_v39 = vld [vmem:[#allocation5 + $0x318] sm:$0xff]  ;;  %v1416_v42 = vpack.c.bf16 %v276_v36, %v274_v35  ;;  %v275_v45 = vld [vmem:[#allocation5 + $0x110] sm:$0xff]  ;;  %v337_v46 = vld [vmem:[#allocation5 + $0x300] sm:$0xff] }
  0x3f   :  { %v1986_v47 = vpack.c.bf16 %v340_v39, %v338_v37  ;;  %v339_v48 = vld [vmem:[#allocation5 + $0x310] sm:$0xff]  ;;  %v278_v49 = vld [vmem:[#allocation5 + $0x128] sm:$0xff]  ;;  %v280_v50 = vld [vmem:[#allocation5 + $0x138] sm:$0xff]  ;;  %v1418_v54 = vpack.c.bf16 %v275_v45, %v273_v44 }
  0x40   :  { %1407 = vmatpush1.bf16.msra.mxu1 %v1406_v11  ;;  %v342_v52 = vld [vmem:[#allocation5 + $0x328] sm:$0xff]  ;;  %v344_v53 = vld [vmem:[#allocation5 + $0x338] sm:$0xff]  ;;  %v1989_v55 = vpack.c.bf16 %v339_v48, %v337_v46  ;;  %v1420_v57 = vpack.c.bf16 %v280_v50, %v278_v49  ;;  %v277_v58 = vld [vmem:[#allocation5 + $0x120] sm:$0xff] }
  0x41   :  { %1471 = vmatpush1.bf16.msra.mxu0 %v1971_v13  ;;  %1409 = vmatprep.subr.bf16.mxu1 %v1408_v14  ;;  %v279_v59 = vld [vmem:[#allocation5 + $0x130] sm:$0xff]  ;;  %v341_v60 = vld [vmem:[#allocation5 + $0x320] sm:$0xff]  ;;  %v1992_v61 = vpack.c.bf16 %v344_v53, %v342_v52  ;;  %v282_v0 = vld [vmem:[#allocation5 + $0x148] sm:$0xff] }
  0x42   :  { %1473 = vmatprep.subr.bf16.mxu0 %v1974_v19  ;;  %v343_v62 = vld [vmem:[#allocation5 + $0x330] sm:$0xff]  ;;  %v284_v1 = vld [vmem:[#allocation5 + $0x158] sm:$0xff]  ;;  %v346_v2 = vld [vmem:[#allocation5 + $0x348] sm:$0xff]  ;;  %v1422_v5 = vpack.c.bf16 %v279_v59, %v277_v58 }
  0x43   :  { %v348_v3 = vld [vmem:[#allocation5 + $0x358] sm:$0xff]  ;;  %v1995_v6 = vpack.c.bf16 %v343_v62, %v341_v60  ;;  %v1424_v8 = vpack.c.bf16 %v284_v1, %v282_v0  ;;  %v281_v9 = vld [vmem:[#allocation5 + $0x140] sm:$0xff]  ;;  %v283_v10 = vld [vmem:[#allocation5 + $0x150] sm:$0xff] }
  0x44   :  { %1411 = vmatpush1.bf16.msra.mxu1 %v1410_v26  ;;  %v345_v11 = vld [vmem:[#allocation5 + $0x340] sm:$0xff]  ;;  %v1998_v14 = vpack.c.bf16 %v348_v3, %v346_v2  ;;  %v347_v15 = vld [vmem:[#allocation5 + $0x350] sm:$0xff]  ;;  %v286_v16 = vld [vmem:[#allocation5 + $0x168] sm:$0xff]  ;;  %v1426_v22 = vpack.c.bf16 %v283_v10, %v281_v9 }
  0x45   :  { %1475 = vmatpush1.bf16.msra.mxu0 %v1977_v27  ;;  %1413 = vmatprep.subr.bf16.mxu1 %v1412_v28  ;;  %v288_v18 = vld [vmem:[#allocation5 + $0x178] sm:$0xff]  ;;  %v350_v20 = vld [vmem:[#allocation5 + $0x368] sm:$0xff]  ;;  %v285_v23 = vld [vmem:[#allocation5 + $0x160] sm:$0xff]  ;;  %v2001_v24 = vpack.c.bf16 %v347_v15, %v345_v11 }
  0x46   :  { %1477 = vmatprep.subr.bf16.mxu0 %v1980_v33  ;;  %v352_v21 = vld [vmem:[#allocation5 + $0x378] sm:$0xff]  ;;  %v1428_v26 = vpack.c.bf16 %v288_v18, %v286_v16  ;;  %v287_v28 = vld [vmem:[#allocation5 + $0x170] sm:$0xff]  ;;  %v349_v29 = vld [vmem:[#allocation5 + $0x360] sm:$0xff] }
  0x47   :  { %v351_v31 = vld [vmem:[#allocation5 + $0x370] sm:$0xff]  ;;  %v2004_v32 = vpack.c.bf16 %v352_v21, %v350_v20  ;;  %v290_v34 = vld [vmem:[#allocation5 + $0x188] sm:$0xff]  ;;  %v292_v35 = vld [vmem:[#allocation5 + $0x198] sm:$0xff] }
  0x48   :  { %1415 = vmatpush1.bf16.msra.mxu1 %v1414_v40  ;;  %v44_v36 = vld [vmem:[#allocation2 + $0x8] sm:$0xff]  ;;  %v354_v37 = vld [vmem:[#allocation5 + $0x388] sm:$0xff]  ;;  %v2007_v44 = vpack.c.bf16 %v351_v31, %v349_v29  ;;  %v1432_v45 = vpack.c.bf16 %v292_v35, %v290_v34  ;;  %v289_v46 = vld [vmem:[#allocation5 + $0x180] sm:$0xff] }
  0x49   :  { %1479 = vmatpush1.bf16.msra.mxu0 %v1983_v41  ;;  %1417 = vmatprep.subr.bf16.mxu1 %v1416_v42  ;;  %v356_v39 = vld [vmem:[#allocation5 + $0x398] sm:$0xff]  ;;  %v46_v40 = vld [vmem:[#allocation2 + $0x18] sm:$0xff]  ;;  %v1430_v42 = vpack.c.bf16 %v287_v28, %v285_v23  ;;  %v291_v48 = vld [vmem:[#allocation5 + $0x190] sm:$0xff] }
  0x4a   :  { %1481 = vmatprep.subr.bf16.mxu0 %v1986_v47  ;;  %509 = vmatprep.mubr.f32.mxu1 %v44_v36  ;;  %v353_v49 = vld [vmem:[#allocation5 + $0x380] sm:$0xff]  ;;  %v2010_v50 = vpack.c.bf16 %v356_v39, %v354_v37  ;;  %v355_v52 = vld [vmem:[#allocation5 + $0x390] sm:$0xff]  ;;  %v294_v53 = vld [vmem:[#allocation5 + $0x1a8] sm:$0xff]  ;;  %v1434_v59 = vpack.c.bf16 %v291_v48, %v289_v46 }
  0x4b   :  { %772 = vmatprep.mubr.f32.mxu0 %v46_v40  ;;  %v360_v58 = vld [vmem:[#allocation5 + $0x3b8] sm:$0xff]  ;;  %v2013_v60 = vpack.c.bf16 %v355_v52, %v353_v49  ;;  %v293_v0 = vld [vmem:[#allocation5 + $0x1a0] sm:$0xff]  ;;  %v295_v1 = vld [vmem:[#allocation5 + $0x1b0] sm:$0xff] }
  0x4c   :  { %1419 = vmatpush1.bf16.msra.mxu1 %v1418_v54  ;;  %v296_v54 = vld [vmem:[#allocation5 + $0x1b8] sm:$0xff]  ;;  %v357_v2 = vld [vmem:[#allocation5 + $0x3a0] sm:$0xff]  ;;  %v362_v10 = vld [vmem:[#allocation5 + $0x3c8] sm:$0xff]  ;;  %v1438_v15 = vpack.c.bf16 %v295_v1, %v293_v0 }
  0x4d   :  { %1483 = vmatpush1.bf16.msra.mxu0 %v1989_v55  ;;  %1421 = vmatprep.subr.bf16.mxu1 %v1420_v57  ;;  %v358_v57 = vld [vmem:[#allocation5 + $0x3a8] sm:$0xff]  ;;  %v1436_v62 = vpack.c.bf16 %v296_v54, %v294_v53  ;;  %v300_v9 = vld [vmem:[#allocation5 + $0x1d8] sm:$0xff]  ;;  %v297_v20 = vld [vmem:[#allocation5 + $0x1c0] sm:$0xff] }
  0x4e   :  { %1485 = vmatprep.subr.bf16.mxu0 %v1992_v61  ;;  %v2016_v3 = vpack.c.bf16 %v360_v58, %v358_v57  ;;  %v364_v11 = vld [vmem:[#allocation5 + $0x3d8] sm:$0xff]  ;;  %v299_v21 = vld [vmem:[#allocation5 + $0x1d0] sm:$0xff]  ;;  %v302_v28 = vld [vmem:[#allocation5 + $0x1e8] sm:$0xff] }
  0x4f   :  { %v2022_v23 = vpack.c.bf16 %v364_v11, %v362_v10  ;;  %v304_v29 = vld [vmem:[#allocation5 + $0x1f8] sm:$0xff]  ;;  %v366_v31 = vld [vmem:[#allocation5 + $0x3e8] sm:$0xff]  ;;  %v1442_v35 = vpack.c.bf16 %v299_v21, %v297_v20  ;;  %v301_v39 = vld [vmem:[#allocation5 + $0x1e0] sm:$0xff] }
  0x50   :  { %1423 = vmatpush1.bf16.msra.mxu1 %v1422_v5  ;;  %v359_v5 = vld [vmem:[#allocation5 + $0x3b0] sm:$0xff]  ;;  %v368_v34 = vld [vmem:[#allocation5 + $0x3f8] sm:$0xff]  ;;  %v1444_v37 = vpack.c.bf16 %v304_v29, %v302_v28  ;;  %v370_v48 = vld [vmem:[#allocation5 + $0x408] sm:$0xff] }
  0x51   :  { %1487 = vmatpush1.bf16.msra.mxu0 %v1995_v6  ;;  %1425 = vmatprep.subr.bf16.mxu1 %v1424_v8  ;;  %v298_v8 = vld [vmem:[#allocation5 + $0x1c8] sm:$0xff]  ;;  %v2019_v16 = vpack.c.bf16 %v359_v5, %v357_v2  ;;  %v303_v40 = vld [vmem:[#allocation5 + $0x1f0] sm:$0xff]  ;;  %v372_v49 = vld [vmem:[#allocation5 + $0x418] sm:$0xff] }
  0x52   :  { %1489 = vmatprep.subr.bf16.mxu0 %v1998_v14  ;;  %v1440_v18 = vpack.c.bf16 %v300_v9, %v298_v8  ;;  %v367_v46 = vld [vmem:[#allocation5 + $0x3f0] sm:$0xff]  ;;  %v1446_v52 = vpack.c.bf16 %v303_v40, %v301_v39  ;;  %v1512_v54 = vpack.c.bf16 %v372_v49, %v370_v48  ;;  %v369_v57 = vld [vmem:[#allocation5 + $0x400] sm:$0xff]  ;;  %v50_v5 = vld [vmem:[#allocation2 + $0x38] sm:$0xff] }
  0x53   :  { %v371_v58 = vld [vmem:[#allocation5 + $0x410] sm:$0xff]  ;;  %v45_v1 = vld [vmem:[#allocation2 + $0x10] sm:$0xff]  ;;  %v52_v11 = vld [vmem:[#allocation2 + $0x48] sm:$0xff] }
  0x54   :  { %1427 = vmatpush1.bf16.msra.mxu1 %v1426_v22  ;;  %v361_v22 = vld [vmem:[#allocation5 + $0x3c0] sm:$0xff]  ;;  %v43_v0 = vld [vmem:[#allocation2] sm:$0xff]  ;;  %v1514_v2 = vpack.c.bf16 %v371_v58, %v369_v57  ;;  %v62_v40 = vld [vmem:[#allocation2 + $0x98] sm:$0xff] }
  0x55   :  { %1491 = vmatpush1.bf16.msra.mxu0 %v2001_v24  ;;  %1429 = vmatprep.subr.bf16.mxu1 %v1428_v26  ;;  %v363_v26 = vld [vmem:[#allocation5 + $0x3d0] sm:$0xff]  ;;  %v373_v9 = vld [vmem:[#allocation5 + $0x420] sm:$0xff] }
  0x56   :  { %1493 = vmatprep.subr.bf16.mxu0 %v2004_v32  ;;  %v2025_v36 = vpack.c.bf16 %v363_v26, %v361_v22  ;;  %v375_v10 = vld [vmem:[#allocation5 + $0x430] sm:$0xff]  ;;  %v49_v20 = vld [vmem:[#allocation2 + $0x30] sm:$0xff]  ;;  %v58_v26 = vld [vmem:[#allocation2 + $0x78] sm:$0xff] }
  0x57   :  { %v51_v21 = vld [vmem:[#allocation2 + $0x40] sm:$0xff]  ;;  %v1518_v22 = vpack.c.bf16 %v375_v10, %v373_v9  ;;  %v377_v29 = vld [vmem:[#allocation5 + $0x440] sm:$0xff]  ;;  %v74_v10 = vld [vmem:[#allocation2 + $0xf8] sm:$0xff] }
  0x58   :  { %1431 = vmatpush1.bf16.msra.mxu1 %v1430_v42  ;;  %v2028_v42 = vpack.c.bf16 %v368_v34, %v366_v31  ;;  %v379_v31 = vld [vmem:[#allocation5 + $0x450] sm:$0xff]  ;;  %v382_v34 = vld [vmem:[#allocation5 + $0x468] sm:$0xff]  ;;  %v381_v48 = vld [vmem:[#allocation5 + $0x460] sm:$0xff] }
  0x59   :  { %1495 = vmatpush1.bf16.msra.mxu0 %v2007_v44  ;;  %1433 = vmatprep.subr.bf16.mxu1 %v1432_v45  ;;  %v365_v45 = vld [vmem:[#allocation5 + $0x3e0] sm:$0xff]  ;;  %v1522_v39 = vpack.c.bf16 %v379_v31, %v377_v29  ;;  %v383_v49 = vld [vmem:[#allocation5 + $0x470] sm:$0xff] }
  0x5a   :  { %1497 = vmatprep.subr.bf16.mxu0 %v2010_v50  ;;  %v2031_v53 = vpack.c.bf16 %v367_v46, %v365_v45  ;;  %v64_v45 = vld [vmem:[#allocation2 + $0xa8] sm:$0xff]  ;;  %v63_v57 = vld [vmem:[#allocation2 + $0xa0] sm:$0xff]  ;;  %v1526_v58 = vpack.c.bf16 %v383_v49, %v381_v48  ;;  %v393_v31 = vld [vmem:[#allocation5 + $0x4c0] sm:$0xff] }
  0x5b   :  { %v399_v48 = vld [vmem:[#allocation5 + $0x4f0] sm:$0xff]  ;;  %v404_v49 = vld [vmem:[#allocation5 + $0x518] sm:$0xff] }
  0x5c   :  { %1435 = vmatpush1.bf16.msra.mxu1 %v1434_v59  ;;  %v374_v59 = vld [vmem:[#allocation5 + $0x428] sm:$0xff] }
  0x5d   :  { %1499 = vmatpush1.bf16.msra.mxu0 %v2013_v60  ;;  %1437 = vmatprep.subr.bf16.mxu1 %v1436_v62  ;;  %v376_v62 = vld [vmem:[#allocation5 + $0x438] sm:$0xff] }
  0x5e   :  { %1501 = vmatprep.subr.bf16.mxu0 %v2016_v3  ;;  %v1516_v8 = vpack.c.bf16 %v376_v62, %v374_v59  ;;  %v68_v59 = vld [vmem:[#allocation2 + $0xc8] sm:$0xff]  ;;  %v70_v62 = vld [vmem:[#allocation2 + $0xd8] sm:$0xff] }
  0x60   :  { %1439 = vmatpush1.bf16.msra.mxu1 %v1438_v15  ;;  %v378_v15 = vld [vmem:[#allocation5 + $0x448] sm:$0xff] }
  0x61   :  { %1503 = vmatpush1.bf16.msra.mxu0 %v2019_v16  ;;  %1441 = vmatprep.subr.bf16.mxu1 %v1440_v18  ;;  %v380_v18 = vld [vmem:[#allocation5 + $0x458] sm:$0xff] }
  0x62   :  { %1505 = vmatprep.subr.bf16.mxu0 %v2022_v23  ;;  %v1520_v28 = vpack.c.bf16 %v380_v18, %v378_v15  ;;  %v389_v18 = vld [vmem:[#allocation5 + $0x4a0] sm:$0xff] }
  0x64   :  { %1443 = vmatpush1.bf16.msra.mxu1 %v1442_v35  ;;  %v384_v35 = vld [vmem:[#allocation5 + $0x478] sm:$0xff] }
  0x65   :  { %1507 = vmatpush1.bf16.msra.mxu0 %v2025_v36  ;;  %1445 = vmatprep.subr.bf16.mxu1 %v1444_v37  ;;  %v57_v37 = vld [vmem:[#allocation2 + $0x70] sm:$0xff]  ;;  %v1524_v46 = vpack.c.bf16 %v384_v35, %v382_v34  ;;  %v395_v34 = vld [vmem:[#allocation5 + $0x4d0] sm:$0xff]  ;;  %v400_v35 = vld [vmem:[#allocation5 + $0x4f8] sm:$0xff] }
  0x66   :  { %1509 = vmatprep.subr.bf16.mxu0 %v2028_v42 }
  0x68   :  { %1447 = vmatpush1.bf16.msra.mxu1 %v1446_v52  ;;  %v386_v52 = vld [vmem:[#allocation5 + $0x488] sm:$0xff] }
  0x69   :  { %1511 = vmatpush1.bf16.msra.mxu0 %v2031_v53  ;;  %1576 = vmatprep.subr.bf16.mxu1 %v1939_v7  ;;  %v56_v7 = vld [vmem:[#allocation2 + $0x68] sm:$0xff] }
  0x6a   :  { %1513 = vmatprep.subr.bf16.mxu0 %v1512_v54  ;;  %v61_v54 = vld [vmem:[#allocation2 + $0x90] sm:$0xff] }
  0x6b   :  { %510 = vmatmul.mubr.f32.vlgmr.msra.gmra.mrb[0].mxu1 %v43_v0  ;;  %v385_v0 = vld [vmem:[#allocation5 + $0x480] sm:$0xff] }
  0x6c   :  { %773 = vmatmul.mubr.f32.vlgmr.msra.gmra.mrb[0].mxu0 %v45_v1  ;;  %1592 = vmatpush1.bf16.msra.mxu1 %v1941_v12  ;;  %v55_v12 = vld [vmem:[#allocation2 + $0x60] sm:$0xff] }
  0x6d   :  { %1515 = vmatpush1.bf16.msra.mxu0 %v1514_v2  ;;  %515 = vmatprep.mubr.f32.mxu1 %v50_v5  ;;  %v387_v1 = vld [vmem:[#allocation5 + $0x490] sm:$0xff]  ;;  %v390_v2 = vld [vmem:[#allocation5 + $0x4a8] sm:$0xff]  ;;  %v392_v5 = vld [vmem:[#allocation5 + $0x4b8] sm:$0xff] }
  0x6e   :  { %778 = vmatprep.mubr.f32.mxu0 %v52_v11  ;;  %1517 = vmatprep.subr.bf16.mxu0 %v1516_v8  ;;  %v69_v8 = vld [vmem:[#allocation2 + $0xd0] sm:$0xff]  ;;  %v1530_v9 = vpack.c.bf16 %v387_v1, %v385_v0  ;;  %v76_v11 = vld [vmem:[#allocation2 + $0x108] sm:$0xff]  ;;  %v1532_v15 = vpack.c.bf16 %v392_v5, %v390_v2  ;;  %v98_v2 = vld [vmem:[#allocation2 + $0x1b8] sm:$0xff] }
  0x6f   :  { %516 = vmatmul.mubr.f32.gmra.mrb[2].mxu1 %v49_v20  ;;  %1577 = vmatprep.subr.bf16.mxu1 %v1944_v17  ;;  %v388_v17 = vld [vmem:[#allocation5 + $0x498] sm:$0xff]  ;;  %v391_v20 = vld [vmem:[#allocation5 + $0x4b0] sm:$0xff]  ;;  %v93_v0 = vld [vmem:[#allocation2 + $0x190] sm:$0xff] }
  0x70   :  { %779 = vmatmul.mubr.f32.gmra.mrb[2].mxu0 %v51_v21  ;;  %521 = vmatprep.mubr.f32.mxu1 %v56_v7  ;;  %v396_v21 = vld [vmem:[#allocation5 + $0x4d8] sm:$0xff]  ;;  %v1534_v7 = vpack.c.bf16 %v391_v20, %v389_v18  ;;  %v106_v20 = vld [vmem:[#allocation2 + $0x1f8] sm:$0xff] }
  0x71   :  { %1519 = vmatpush1.bf16.msra.mxu0 %v1518_v22  ;;  %784 = vmatprep.mubr.f32.mxu0 %v58_v26  ;;  %v75_v22 = vld [vmem:[#allocation2 + $0x100] sm:$0xff]  ;;  %v80_v26 = vld [vmem:[#allocation2 + $0x128] sm:$0xff] }
  0x72   :  { %1521 = vmatprep.subr.bf16.mxu0 %v1520_v28  ;;  %1593 = vmatpush1.bf16.msra.mxu1 %v1948_v25  ;;  %v1528_v25 = vpack.c.bf16 %v388_v17, %v386_v52  ;;  %v82_v28 = vld [vmem:[#allocation2 + $0x138] sm:$0xff]  ;;  %v87_v52 = vld [vmem:[#allocation2 + $0x160] sm:$0xff]  ;;  %v100_v5 = vld [vmem:[#allocation2 + $0x1c8] sm:$0xff] }
  0x73   :  { %522 = vmatmul.mubr.f32.gmra.mrb[4].mxu1 %v55_v12  ;;  %1578 = vmatprep.subr.bf16.mxu1 %v1950_v30  ;;  %v67_v30 = vld [vmem:[#allocation2 + $0xc0] sm:$0xff]  ;;  %v81_v12 = vld [vmem:[#allocation2 + $0x130] sm:$0xff]  ;;  %v104_v18 = vld [vmem:[#allocation2 + $0x1e8] sm:$0xff] }
  0x74   :  { %785 = vmatmul.mubr.f32.gmra.mrb[4].mxu0 %v57_v37  ;;  %527 = vmatprep.mubr.f32.mxu1 %v62_v40  ;;  %v1538_v37 = vpack.c.bf16 %v395_v34, %v393_v31  ;;  %v88_v40 = vld [vmem:[#allocation2 + $0x168] sm:$0xff]  ;;  %v413_v34 = vld [vmem:[#allocation5 + $0x560] sm:$0xff] }
  0x75   :  { %1523 = vmatpush1.bf16.msra.mxu0 %v1522_v39  ;;  %790 = vmatprep.mubr.f32.mxu0 %v64_v45  ;;  %v86_v39 = vld [vmem:[#allocation2 + $0x158] sm:$0xff] }
  0x76   :  { %1525 = vmatprep.subr.bf16.mxu0 %v1524_v46  ;;  %1594 = vmatpush1.bf16.msra.mxu1 %v1953_v38  ;;  %v394_v38 = vld [vmem:[#allocation5 + $0x4c8] sm:$0xff]  ;;  %v397_v46 = vld [vmem:[#allocation5 + $0x4e0] sm:$0xff] }
  0x77   :  { %528 = vmatmul.mubr.f32.gmra.mrb[6].mxu1 %v61_v54  ;;  %1579 = vmatprep.subr.bf16.mxu1 %v1956_v43  ;;  %v73_v43 = vld [vmem:[#allocation2 + $0xf0] sm:$0xff]  ;;  %v1536_v29 = vpack.c.bf16 %v396_v21, %v394_v38  ;;  %v1542_v17 = vpack.c.bf16 %v399_v48, %v397_v46  ;;  %v92_v54 = vld [vmem:[#allocation2 + $0x188] sm:$0xff]  ;;  %v419_v46 = vld [vmem:[#allocation5 + $0x590] sm:$0xff] }
  0x78   :  { %791 = vmatmul.mubr.f32.gmra.mrb[6].mxu0 %v63_v57  ;;  %533 = vmatprep.mubr.f32.mxu1 %v68_v59  ;;  %v94_v57 = vld [vmem:[#allocation2 + $0x198] sm:$0xff]  ;;  %v401_v59 = vld [vmem:[#allocation5 + $0x500] sm:$0xff]  ;;  %v424_v48 = vld [vmem:[#allocation5 + $0x5b8] sm:$0xff] }
  0x79   :  { %1527 = vmatpush1.bf16.msra.mxu0 %v1526_v58  ;;  %796 = vmatprep.mubr.f32.mxu0 %v70_v62  ;;  %v403_v62 = vld [vmem:[#allocation5 + $0x510] sm:$0xff]  ;;  %v409_v21 = vld [vmem:[#allocation5 + $0x540] sm:$0xff] }
  0x7a   :  { %1529 = vmatprep.subr.bf16.mxu0 %v1528_v25  ;;  %1595 = vmatpush1.bf16.msra.mxu1 %v1959_v51  ;;  %v398_v51 = vld [vmem:[#allocation5 + $0x4e8] sm:$0xff]  ;;  %v408_v25 = vld [vmem:[#allocation5 + $0x538] sm:$0xff]  ;;  %v1546_v1 = vpack.c.bf16 %v403_v62, %v401_v59  ;;  %v123_v59 = vld [vmem:[#allocation2 + $0x280] sm:$0xff] }
  0x7b   :  { %534 = vmatmul.mubr.f32.gmra.mrb[8].mxu1 %v67_v30  ;;  %1580 = vmatprep.subr.bf16.mxu1 %v1962_v56  ;;  %v79_v56 = vld [vmem:[#allocation2 + $0x120] sm:$0xff]  ;;  %v1540_v45 = vpack.c.bf16 %v400_v35, %v398_v51  ;;  %v420_v35 = vld [vmem:[#allocation5 + $0x598] sm:$0xff] }
  0x7c   :  { %797 = vmatmul.mubr.f32.gmra.mrb[8].mxu0 %v69_v8  ;;  %539 = vmatprep.mubr.f32.mxu1 %v74_v10  ;;  %v405_v8 = vld [vmem:[#allocation5 + $0x520] sm:$0xff]  ;;  %v412_v10 = vld [vmem:[#allocation5 + $0x558] sm:$0xff]  ;;  %v415_v51 = vld [vmem:[#allocation5 + $0x570] sm:$0xff] }
  0x7d   :  { %1531 = vmatpush1.bf16.msra.mxu0 %v1530_v9  ;;  %802 = vmatprep.mubr.f32.mxu0 %v76_v11  ;;  %v407_v9 = vld [vmem:[#allocation5 + $0x530] sm:$0xff] }
  0x7e   :  { %1533 = vmatprep.subr.bf16.mxu0 %v1532_v15  ;;  %1596 = vmatpush1.bf16.msra.mxu1 %v1965_v63  ;;  %v402_v63 = vld [vmem:[#allocation5 + $0x508] sm:$0xff]  ;;  %v99_v11 = vld [vmem:[#allocation2 + $0x1c0] sm:$0xff]  ;;  %v1550_v15 = vpack.c.bf16 %v407_v9, %v405_v8  ;;  %v136_v9 = vld [vmem:[#allocation2 + $0x2e8] sm:$0xff] }
  0x7f   :  { %540 = vmatmul.mubr.f32.gmra.mrb[10].mxu1 %v73_v43  ;;  %1581 = vmatprep.subr.bf16.mxu1 %v1968_v4  ;;  %v85_v4 = vld [vmem:[#allocation2 + $0x150] sm:$0xff]  ;;  %v1544_v58 = vpack.c.bf16 %v404_v49, %v402_v63  ;;  %v411_v43 = vld [vmem:[#allocation5 + $0x550] sm:$0xff]  ;;  %v134_v8 = vld [vmem:[#allocation2 + $0x2d8] sm:$0xff] }
  0x80   :  { %803 = vmatmul.mubr.f32.gmra.mrb[10].mxu0 %v75_v22  ;;  %545 = vmatprep.mubr.f32.mxu1 %v80_v26  ;;  %v416_v22 = vld [vmem:[#allocation5 + $0x578] sm:$0xff]  ;;  %v1554_v26 = vpack.c.bf16 %v411_v43, %v409_v21  ;;  %v117_v63 = vld [vmem:[#allocation2 + $0x250] sm:$0xff] }
  0x81   :  { %1535 = vmatpush1.bf16.msra.mxu0 %v1534_v7  ;;  %808 = vmatprep.mubr.f32.mxu0 %v82_v28  ;;  %v105_v7 = vld [vmem:[#allocation2 + $0x1f0] sm:$0xff]  ;;  %v110_v28 = vld [vmem:[#allocation2 + $0x218] sm:$0xff] }
  0x82   :  { %1537 = vmatprep.subr.bf16.mxu0 %v1536_v29  ;;  %1597 = vmatpush1.bf16.msra.mxu1 %v1971_v13  ;;  %v406_v13 = vld [vmem:[#allocation5 + $0x528] sm:$0xff]  ;;  %v112_v29 = vld [vmem:[#allocation2 + $0x228] sm:$0xff]  ;;  %v145_v21 = vld [vmem:[#allocation2 + $0x330] sm:$0xff] }
  0x83   :  { %546 = vmatmul.mubr.f32.gmra.mrb[12].mxu1 %v79_v56  ;;  %1582 = vmatprep.subr.bf16.mxu1 %v1974_v19  ;;  %v91_v19 = vld [vmem:[#allocation2 + $0x180] sm:$0xff]  ;;  %v1548_v30 = vpack.c.bf16 %v408_v25, %v406_v13  ;;  %v128_v13 = vld [vmem:[#allocation2 + $0x2a8] sm:$0xff]  ;;  %v130_v25 = vld [vmem:[#allocation2 + $0x2b8] sm:$0xff] }
  0x84   :  { %809 = vmatmul.mubr.f32.gmra.mrb[12].mxu0 %v81_v12  ;;  %551 = vmatprep.mubr.f32.mxu1 %v86_v39  ;;  %v111_v56 = vld [vmem:[#allocation2 + $0x220] sm:$0xff]  ;;  %v1558_v12 = vpack.c.bf16 %v415_v51, %v413_v34  ;;  %v118_v39 = vld [vmem:[#allocation2 + $0x258] sm:$0xff]  ;;  %v53_v43 = vld [vmem:[#allocation2 + $0x50] sm:$0xff] }
  0x85   :  { %1539 = vmatpush1.bf16.msra.mxu0 %v1538_v37  ;;  %814 = vmatprep.mubr.f32.mxu0 %v88_v40  ;;  %v116_v37 = vld [vmem:[#allocation2 + $0x248] sm:$0xff]  ;;  %v71_v34 = vld [vmem:[#allocation2 + $0xe0] sm:$0xff]  ;;  %v170_v51 = vld [vmem:[#allocation2 + $0x3f8] sm:$0xff] }
  0x86   :  { %1541 = vmatprep.subr.bf16.mxu0 %v1540_v45  ;;  %1598 = vmatpush1.bf16.msra.mxu1 %v1977_v27  ;;  %v410_v27 = vld [vmem:[#allocation5 + $0x548] sm:$0xff]  ;;  %v417_v45 = vld [vmem:[#allocation5 + $0x580] sm:$0xff] }
  0x87   :  { %552 = vmatmul.mubr.f32.gmra.mrb[14].mxu1 %v85_v4  ;;  %1583 = vmatprep.subr.bf16.mxu1 %v1980_v33  ;;  %v97_v33 = vld [vmem:[#allocation2 + $0x1b0] sm:$0xff]  ;;  %v1552_v38 = vpack.c.bf16 %v412_v10, %v410_v27  ;;  %v1562_v49 = vpack.c.bf16 %v419_v46, %v417_v45  ;;  %v122_v4 = vld [vmem:[#allocation2 + $0x278] sm:$0xff] }
  0x88   :  { %815 = vmatmul.mubr.f32.gmra.mrb[14].mxu0 %v87_v52  ;;  %557 = vmatprep.mubr.f32.mxu1 %v92_v54  ;;  %v124_v52 = vld [vmem:[#allocation2 + $0x288] sm:$0xff]  ;;  %v421_v54 = vld [vmem:[#allocation5 + $0x5a0] sm:$0xff]  ;;  %v90_v45 = vld [vmem:[#allocation2 + $0x178] sm:$0xff] }
  0x89   :  { %1543 = vmatpush1.bf16.msra.mxu0 %v1542_v17  ;;  %820 = vmatprep.mubr.f32.mxu0 %v94_v57  ;;  %v423_v57 = vld [vmem:[#allocation5 + $0x5b0] sm:$0xff]  ;;  %v429_v10 = vld [vmem:[#allocation5 + $0x5e0] sm:$0xff] }
  0x8a   :  { %1545 = vmatprep.subr.bf16.mxu0 %v1544_v58  ;;  %1599 = vmatpush1.bf16.msra.mxu1 %v1983_v41  ;;  %v414_v41 = vld [vmem:[#allocation5 + $0x568] sm:$0xff]  ;;  %v428_v58 = vld [vmem:[#allocation5 + $0x5d8] sm:$0xff]  ;;  %v1566_v62 = vpack.c.bf16 %v423_v57, %v421_v54  ;;  %v181_v46 = vld [vmem:[#allocation2 + $0x450] sm:$0xff] }
  0x8b   :  { %558 = vmatmul.mubr.f32.gmra.mrb[16].mxu1 %v91_v19  ;;  %1584 = vmatprep.subr.bf16.mxu1 %v1986_v47  ;;  %v103_v47 = vld [vmem:[#allocation2 + $0x1e0] sm:$0xff]  ;;  %v1556_v31 = vpack.c.bf16 %v416_v22, %v414_v41  ;;  %v60_v41 = vld [vmem:[#allocation2 + $0x88] sm:$0xff]  ;;  %v101_v54 = vld [vmem:[#allocation2 + $0x1d0] sm:$0xff] }
  0x8c   :  { %821 = vmatmul.mubr.f32.gmra.mrb[16].mxu0 %v93_v0  ;;  %563 = vmatprep.mubr.f32.mxu1 %v98_v2  ;;  %v425_v0 = vld [vmem:[#allocation5 + $0x5c0] sm:$0xff]  ;;  %v432_v2 = vld [vmem:[#allocation5 + $0x5f8] sm:$0xff]  ;;  %v59_v22 = vld [vmem:[#allocation2 + $0x80] sm:$0xff] }
  0x8d   :  { %1547 = vmatpush1.bf16.msra.mxu0 %v1546_v1  ;;  %826 = vmatprep.mubr.f32.mxu0 %v100_v5  ;;  %v427_v1 = vld [vmem:[#allocation5 + $0x5d0] sm:$0xff]  ;;  %v129_v5 = vld [vmem:[#allocation2 + $0x2b0] sm:$0xff]  ;;  %v200_v57 = vld [vmem:[#allocation2 + $0x4e8] sm:$0xff] }
  0x8e   :  { %1549 = vmatprep.subr.bf16.mxu0 %v1548_v30  ;;  %1600 = vmatpush1.bf16.msra.mxu1 %v1989_v55  ;;  %v418_v55 = vld [vmem:[#allocation5 + $0x588] sm:$0xff]  ;;  %v1570_v30 = vpack.c.bf16 %v427_v1, %v425_v0  ;;  %v120_v0 = vld [vmem:[#allocation2 + $0x268] sm:$0xff]  ;;  %v211_v1 = vld [vmem:[#allocation2 + $0x540] sm:$0xff] }
  0x8f   :  { %564 = vmatmul.mubr.f32.gmra.mrb[18].mxu1 %v97_v33  ;;  %1585 = vmatprep.subr.bf16.mxu1 %v1992_v61  ;;  %v109_v61 = vld [vmem:[#allocation2 + $0x210] sm:$0xff]  ;;  %v1560_v40 = vpack.c.bf16 %v420_v35, %v418_v55  ;;  %v431_v33 = vld [vmem:[#allocation5 + $0x5f0] sm:$0xff]  ;;  %v78_v55 = vld [vmem:[#allocation2 + $0x118] sm:$0xff] }
  0x90   :  { %827 = vmatmul.mubr.f32.gmra.mrb[18].mxu0 %v99_v11  ;;  %569 = vmatprep.mubr.f32.mxu1 %v104_v18  ;;  %v1574_v11 = vpack.c.bf16 %v431_v33, %v429_v10  ;;  %v48_v18 = vld [vmem:[#allocation2 + $0x28] sm:$0xff]  ;;  %v169_v35 = vld [vmem:[#allocation2 + $0x3f0] sm:$0xff]  ;;  %v131_v10 = vld [vmem:[#allocation2 + $0x2c0] sm:$0xff] }
  0x91   :  { %1551 = vmatpush1.bf16.msra.mxu0 %v1550_v15  ;;  %832 = vmatprep.mubr.f32.mxu0 %v106_v20  ;;  %v140_v15 = vld [vmem:[#allocation2 + $0x308] sm:$0xff]  ;;  %v146_v20 = vld [vmem:[#allocation2 + $0x338] sm:$0xff] }
  0x92   :  { %1553 = vmatprep.subr.bf16.mxu0 %v1552_v38  ;;  %1601 = vmatpush1.bf16.msra.mxu1 %v1995_v6  ;;  %v422_v6 = vld [vmem:[#allocation5 + $0x5a8] sm:$0xff] }
  0x93   :  { %570 = vmatmul.mubr.f32.gmra.mrb[20].mxu1 %v103_v47  ;;  %1586 = vmatprep.subr.bf16.mxu1 %v1998_v14  ;;  %v115_v14 = vld [vmem:[#allocation2 + $0x240] sm:$0xff]  ;;  %v1564_v17 = vpack.c.bf16 %v424_v48, %v422_v6  ;;  %v54_v38 = vld [vmem:[#allocation2 + $0x58] sm:$0xff]  ;;  %v89_v6 = vld [vmem:[#allocation2 + $0x170] sm:$0xff] }
  0x94   :  { %833 = vmatmul.mubr.f32.gmra.mrb[20].mxu0 %v105_v7  ;;  %575 = vmatprep.mubr.f32.mxu1 %v110_v28  ;;  %v158_v47 = vld [vmem:[#allocation2 + $0x398] sm:$0xff]  ;;  %v164_v28 = vld [vmem:[#allocation2 + $0x3c8] sm:$0xff] }
  0x95   :  { %1555 = vmatpush1.bf16.msra.mxu0 %v1554_v26  ;;  %838 = vmatprep.mubr.f32.mxu0 %v112_v29  ;;  %v66_v7 = vld [vmem:[#allocation2 + $0xb8] sm:$0xff]  ;;  %v65_v26 = vld [vmem:[#allocation2 + $0xb0] sm:$0xff]  ;;  %v72_v29 = vld [vmem:[#allocation2 + $0xe8] sm:$0xff] }
  0x96   :  { %1557 = vmatprep.subr.bf16.mxu0 %v1556_v31  ;;  %1602 = vmatpush1.bf16.msra.mxu1 %v2001_v24  ;;  %v426_v24 = vld [vmem:[#allocation5 + $0x5c8] sm:$0xff]  ;;  %v163_v31 = vld [vmem:[#allocation2 + $0x3c0] sm:$0xff]  ;;  %v188_v48 = vld [vmem:[#allocation2 + $0x488] sm:$0xff] }
  0x97   :  { %576 = vmatmul.mubr.f32.gmra.mrb[22].mxu1 %v109_v61  ;;  %1587 = vmatprep.subr.bf16.mxu1 %v2004_v32  ;;  %v121_v32 = vld [vmem:[#allocation2 + $0x270] sm:$0xff]  ;;  %v1568_v19 = vpack.c.bf16 %v428_v58, %v426_v24  ;;  %v108_v24 = vld [vmem:[#allocation2 + $0x208] sm:$0xff]  ;;  %v199_v58 = vld [vmem:[#allocation2 + $0x4e0] sm:$0xff] }
  0x98   :  { %839 = vmatmul.mubr.f32.gmra.mrb[22].mxu0 %v111_v56  ;;  %581 = vmatprep.mubr.f32.mxu1 %v116_v37  ;;  %v77_v61 = vld [vmem:[#allocation2 + $0x110] sm:$0xff]  ;;  %v176_v56 = vld [vmem:[#allocation2 + $0x428] sm:$0xff]  ;;  %v175_v37 = vld [vmem:[#allocation2 + $0x420] sm:$0xff] }
  0x99   :  { %1559 = vmatpush1.bf16.msra.mxu0 %v1558_v12  ;;  %844 = vmatprep.mubr.f32.mxu0 %v118_v39  ;;  %v84_v12 = vld [vmem:[#allocation2 + $0x148] sm:$0xff]  ;;  %v83_v39 = vld [vmem:[#allocation2 + $0x140] sm:$0xff]  ;;  %v230_v33 = vld [vmem:[#allocation2 + $0x5d8] sm:$0xff] }
  0x9a   :  { %1561 = vmatprep.subr.bf16.mxu0 %v1560_v40  ;;  %1603 = vmatpush1.bf16.msra.mxu1 %v2007_v44  ;;  %v430_v44 = vld [vmem:[#allocation5 + $0x5e8] sm:$0xff] }
  0x9b   :  { %582 = vmatmul.mubr.f32.gmra.mrb[24].mxu1 %v115_v14  ;;  %1588 = vmatprep.subr.bf16.mxu1 %v2010_v50  ;;  %v127_v50 = vld [vmem:[#allocation2 + $0x2a0] sm:$0xff]  ;;  %v1572_v27 = vpack.c.bf16 %v432_v2, %v430_v44  ;;  %v182_v40 = vld [vmem:[#allocation2 + $0x458] sm:$0xff]  ;;  %v96_v14 = vld [vmem:[#allocation2 + $0x1a8] sm:$0xff] }
  0x9c   :  { %845 = vmatmul.mubr.f32.gmra.mrb[24].mxu0 %v117_v63  ;;  %587 = vmatprep.mubr.f32.mxu1 %v122_v4  ;;  %v187_v63 = vld [vmem:[#allocation2 + $0x480] sm:$0xff]  ;;  %v194_v4 = vld [vmem:[#allocation2 + $0x4b8] sm:$0xff] }
  0x9d   :  { %1563 = vmatpush1.bf16.msra.mxu0 %v1562_v49  ;;  %850 = vmatprep.mubr.f32.mxu0 %v124_v52  ;;  %v95_v49 = vld [vmem:[#allocation2 + $0x1a0] sm:$0xff]  ;;  %v102_v52 = vld [vmem:[#allocation2 + $0x1d8] sm:$0xff] }
  0x9e   :  { %1565 = vmatprep.subr.bf16.mxu0 %v1564_v17  ;;  %1604 = vmatpush1.bf16.msra.mxu1 %v2013_v60  ;;  %v133_v60 = vld [vmem:[#allocation2 + $0x2d0] sm:$0xff]  ;;  %v119_v44 = vld [vmem:[#allocation2 + $0x260] sm:$0xff]  ;;  %v218_v2 = vld [vmem:[#allocation2 + $0x578] sm:$0xff] }
  0x9f   :  { %588 = vmatmul.mubr.f32.gmra.mrb[26].mxu1 %v121_v32  ;;  %1589 = vmatprep.subr.bf16.mxu1 %v2016_v3  ;;  %v135_v3 = vld [vmem:[#allocation2 + $0x2e0] sm:$0xff]  ;;  %v193_v17 = vld [vmem:[#allocation2 + $0x4b0] sm:$0xff] }
  0xa0   :  { %851 = vmatmul.mubr.f32.gmra.mrb[26].mxu0 %v123_v59  ;;  %593 = vmatprep.mubr.f32.mxu1 %v128_v13  ;;  %v107_v32 = vld [vmem:[#allocation2 + $0x200] sm:$0xff]  ;;  %v206_v59 = vld [vmem:[#allocation2 + $0x518] sm:$0xff]  ;;  %v205_v13 = vld [vmem:[#allocation2 + $0x510] sm:$0xff] }
  0xa1   :  { %1567 = vmatpush1.bf16.msra.mxu0 %v1566_v62  ;;  %856 = vmatprep.mubr.f32.mxu0 %v130_v25  ;;  %v114_v62 = vld [vmem:[#allocation2 + $0x238] sm:$0xff]  ;;  %v113_v25 = vld [vmem:[#allocation2 + $0x230] sm:$0xff] }
  0xa2   :  { %1569 = vmatprep.subr.bf16.mxu0 %v1568_v19  ;;  %1605 = vmatpush1.bf16.msra.mxu1 %v2019_v16  ;;  %v139_v16 = vld [vmem:[#allocation2 + $0x300] sm:$0xff]  ;;  %v212_v19 = vld [vmem:[#allocation2 + $0x548] sm:$0xff] }
  0xa3   :  { %594 = vmatmul.mubr.f32.gmra.mrb[28].mxu1 %v127_v50  ;;  %1590 = vmatprep.subr.bf16.mxu1 %v2022_v23  ;;  %v47_v23 = vld [vmem:[#allocation2 + $0x20] sm:$0xff]  ;;  %v126_v50 = vld [vmem:[#allocation2 + $0x298] sm:$0xff] }
  0xa4   :  { %857 = vmatmul.mubr.f32.gmra.mrb[28].mxu0 %v129_v5  ;;  %599 = vmatprep.mubr.f32.mxu1 %v134_v8  ;;  %v217_v5 = vld [vmem:[#allocation2 + $0x570] sm:$0xff]  ;;  %v224_v8 = vld [vmem:[#allocation2 + $0x5a8] sm:$0xff] }
  0xa5   :  { %1571 = vmatpush1.bf16.msra.mxu0 %v1570_v30  ;;  %862 = vmatprep.mubr.f32.mxu0 %v136_v9  ;;  %v125_v30 = vld [vmem:[#allocation2 + $0x290] sm:$0xff]  ;;  %v132_v9 = vld [vmem:[#allocation2 + $0x2c8] sm:$0xff] }
  0xa6   :  { %1573 = vmatprep.subr.bf16.mxu0 %v1572_v27  ;;  %1606 = vmatpush1.bf16.msra.mxu1 %v2025_v36  ;;  %v152_v36 = vld [vmem:[#allocation2 + $0x368] sm:$0xff]  ;;  %v223_v27 = vld [vmem:[#allocation2 + $0x5a0] sm:$0xff] }
  0xa7   :  { %600 = vmatmul.mubr.f32.gmra.mrb[30].mxu1 %v133_v60  ;;  %1591 = vmatprep.subr.bf16.mxu1 %v2028_v42  ;;  %v151_v42 = vld [vmem:[#allocation2 + $0x360] sm:$0xff]  ;;  %v138_v60 = vld [vmem:[#allocation2 + $0x2f8] sm:$0xff] }
  0xa8   :  { %863 = vmatmul.mubr.f32.gmra.mrb[30].mxu0 %v135_v3  ;;  %605 = vmatprep.mubr.f32.mxu1 %v140_v15  ;;  %v229_v3 = vld [vmem:[#allocation2 + $0x5d0] sm:$0xff]  ;;  %v236_v15 = vld [vmem:[#allocation2 + $0x608] sm:$0xff] }
  0xa9   :  { %1575 = vmatpush1.bf16.msra.mxu0 %v1574_v11  ;;  %1035 = vmatprep.mubr.f32.mxu0 %v48_v18  ;;  %v137_v11 = vld [vmem:[#allocation2 + $0x2f0] sm:$0xff]  ;;  %v144_v18 = vld [vmem:[#allocation2 + $0x328] sm:$0xff] }
  0xaa   :  { %1607 = vmatpush1.bf16.msra.mxu1 %v2031_v53  ;;  %v157_v53 = vld [vmem:[#allocation2 + $0x390] sm:$0xff] }
  0xab   :  { %606 = vmatmul.mubr.f32.gmra.mrb[32].mxu1 %v139_v16  ;;  %v235_v16 = vld [vmem:[#allocation2 + $0x600] sm:$0xff] }
  0xac   :  { %1036 = vmatmul.mubr.f32.vlgmr.msra.gmra.mrb[0].mxu0 %v47_v23  ;;  %611 = vmatprep.mubr.f32.mxu1 %v146_v20  ;;  %v142_v23 = vld [vmem:[#allocation2 + $0x318] sm:$0xff]  ;;  %v143_v20 = vld [vmem:[#allocation2 + $0x320] sm:$0xff] }
  0xad   :  { %1041 = vmatprep.mubr.f32.mxu0 %v54_v38  ;;  %v150_v38 = vld [vmem:[#allocation2 + $0x358] sm:$0xff] }
  0xaf   :  { %612 = vmatmul.mubr.f32.gmra.mrb[34].mxu1 %v145_v21  ;;  %v141_v21 = vld [vmem:[#allocation2 + $0x310] sm:$0xff] }
  0xb0   :  { %1042 = vmatmul.mubr.f32.gmra.mrb[2].mxu0 %v53_v43  ;;  %617 = vmatprep.mubr.f32.mxu1 %v152_v36  ;;  %v148_v43 = vld [vmem:[#allocation2 + $0x348] sm:$0xff]  ;;  %v149_v36 = vld [vmem:[#allocation2 + $0x350] sm:$0xff] }
  0xb1   :  { %1047 = vmatprep.mubr.f32.mxu0 %v60_v41  ;;  %v156_v41 = vld [vmem:[#allocation2 + $0x388] sm:$0xff] }
  0xb3   :  { %618 = vmatmul.mubr.f32.gmra.mrb[36].mxu1 %v151_v42  ;;  %v147_v42 = vld [vmem:[#allocation2 + $0x340] sm:$0xff] }
  0xb4   :  { %1048 = vmatmul.mubr.f32.gmra.mrb[4].mxu0 %v59_v22  ;;  %623 = vmatprep.mubr.f32.mxu1 %v158_v47  ;;  %v154_v22 = vld [vmem:[#allocation2 + $0x378] sm:$0xff]  ;;  %v155_v47 = vld [vmem:[#allocation2 + $0x380] sm:$0xff] }
  0xb5   :  { %1053 = vmatprep.mubr.f32.mxu0 %v66_v7  ;;  %v162_v7 = vld [vmem:[#allocation2 + $0x3b8] sm:$0xff] }
  0xb7   :  { %624 = vmatmul.mubr.f32.gmra.mrb[38].mxu1 %v157_v53  ;;  %v153_v53 = vld [vmem:[#allocation2 + $0x370] sm:$0xff] }
  0xb8   :  { %1054 = vmatmul.mubr.f32.gmra.mrb[6].mxu0 %v65_v26  ;;  %629 = vmatprep.mubr.f32.mxu1 %v164_v28  ;;  %v160_v26 = vld [vmem:[#allocation2 + $0x3a8] sm:$0xff]  ;;  %v161_v28 = vld [vmem:[#allocation2 + $0x3b0] sm:$0xff] }
  0xb9   :  { %1059 = vmatprep.mubr.f32.mxu0 %v72_v29  ;;  %v168_v29 = vld [vmem:[#allocation2 + $0x3e8] sm:$0xff] }
  0xbb   :  { %630 = vmatmul.mubr.f32.gmra.mrb[40].mxu1 %v163_v31  ;;  %v159_v31 = vld [vmem:[#allocation2 + $0x3a0] sm:$0xff] }
  0xbc   :  { %1060 = vmatmul.mubr.f32.gmra.mrb[8].mxu0 %v71_v34  ;;  %635 = vmatprep.mubr.f32.mxu1 %v170_v51  ;;  %v166_v34 = vld [vmem:[#allocation2 + $0x3d8] sm:$0xff]  ;;  %v167_v51 = vld [vmem:[#allocation2 + $0x3e0] sm:$0xff] }
  0xbd   :  { %1065 = vmatprep.mubr.f32.mxu0 %v78_v55  ;;  %v174_v55 = vld [vmem:[#allocation2 + $0x418] sm:$0xff] }
  0xbf   :  { %636 = vmatmul.mubr.f32.gmra.mrb[42].mxu1 %v169_v35  ;;  %v165_v35 = vld [vmem:[#allocation2 + $0x3d0] sm:$0xff] }
  0xc0   :  { %1066 = vmatmul.mubr.f32.gmra.mrb[10].mxu0 %v77_v61  ;;  %641 = vmatprep.mubr.f32.mxu1 %v176_v56  ;;  %v172_v61 = vld [vmem:[#allocation2 + $0x408] sm:$0xff]  ;;  %v173_v56 = vld [vmem:[#allocation2 + $0x410] sm:$0xff] }
  0xc1   :  { %1071 = vmatprep.mubr.f32.mxu0 %v84_v12  ;;  %v180_v12 = vld [vmem:[#allocation2 + $0x448] sm:$0xff] }
  0xc3   :  { %642 = vmatmul.mubr.f32.gmra.mrb[44].mxu1 %v175_v37  ;;  %v171_v37 = vld [vmem:[#allocation2 + $0x400] sm:$0xff] }
  0xc4   :  { %1072 = vmatmul.mubr.f32.gmra.mrb[12].mxu0 %v83_v39  ;;  %647 = vmatprep.mubr.f32.mxu1 %v182_v40  ;;  %v178_v39 = vld [vmem:[#allocation2 + $0x438] sm:$0xff]  ;;  %v179_v40 = vld [vmem:[#allocation2 + $0x440] sm:$0xff] }
  0xc5   :  { %1077 = vmatprep.mubr.f32.mxu0 %v90_v45  ;;  %v186_v45 = vld [vmem:[#allocation2 + $0x478] sm:$0xff] }
  0xc7   :  { %648 = vmatmul.mubr.f32.gmra.mrb[46].mxu1 %v181_v46  ;;  %v177_v46 = vld [vmem:[#allocation2 + $0x430] sm:$0xff] }
  0xc8   :  { %1078 = vmatmul.mubr.f32.gmra.mrb[14].mxu0 %v89_v6  ;;  %653 = vmatprep.mubr.f32.mxu1 %v188_v48  ;;  %v184_v6 = vld [vmem:[#allocation2 + $0x468] sm:$0xff]  ;;  %v185_v48 = vld [vmem:[#allocation2 + $0x470] sm:$0xff] }
  0xc9   :  { %1083 = vmatprep.mubr.f32.mxu0 %v96_v14  ;;  %v192_v14 = vld [vmem:[#allocation2 + $0x4a8] sm:$0xff] }
  0xcb   :  { %654 = vmatmul.mubr.f32.gmra.mrb[48].mxu1 %v187_v63  ;;  %v183_v63 = vld [vmem:[#allocation2 + $0x460] sm:$0xff] }
  0xcc   :  { %1084 = vmatmul.mubr.f32.gmra.mrb[16].mxu0 %v95_v49  ;;  %659 = vmatprep.mubr.f32.mxu1 %v194_v4  ;;  %v190_v49 = vld [vmem:[#allocation2 + $0x498] sm:$0xff]  ;;  %v191_v4 = vld [vmem:[#allocation2 + $0x4a0] sm:$0xff] }
  0xcd   :  { %1089 = vmatprep.mubr.f32.mxu0 %v102_v52  ;;  %v198_v52 = vld [vmem:[#allocation2 + $0x4d8] sm:$0xff] }
  0xcf   :  { %660 = vmatmul.mubr.f32.gmra.mrb[50].mxu1 %v193_v17  ;;  %v189_v17 = vld [vmem:[#allocation2 + $0x490] sm:$0xff] }
  0xd0   :  { %1090 = vmatmul.mubr.f32.gmra.mrb[18].mxu0 %v101_v54  ;;  %665 = vmatprep.mubr.f32.mxu1 %v200_v57  ;;  %v196_v54 = vld [vmem:[#allocation2 + $0x4c8] sm:$0xff]  ;;  %v197_v57 = vld [vmem:[#allocation2 + $0x4d0] sm:$0xff] }
  0xd1   :  { %1095 = vmatprep.mubr.f32.mxu0 %v108_v24  ;;  %v204_v24 = vld [vmem:[#allocation2 + $0x508] sm:$0xff] }
  0xd3   :  { %666 = vmatmul.mubr.f32.gmra.mrb[52].mxu1 %v199_v58  ;;  %v195_v58 = vld [vmem:[#allocation2 + $0x4c0] sm:$0xff] }
  0xd4   :  { %1096 = vmatmul.mubr.f32.gmra.mrb[20].mxu0 %v107_v32  ;;  %671 = vmatprep.mubr.f32.mxu1 %v206_v59  ;;  %v202_v32 = vld [vmem:[#allocation2 + $0x4f8] sm:$0xff]  ;;  %v203_v59 = vld [vmem:[#allocation2 + $0x500] sm:$0xff] }
  0xd5   :  { %1101 = vmatprep.mubr.f32.mxu0 %v114_v62  ;;  %v210_v62 = vld [vmem:[#allocation2 + $0x538] sm:$0xff] }
  0xd7   :  { %672 = vmatmul.mubr.f32.gmra.mrb[54].mxu1 %v205_v13  ;;  %v201_v13 = vld [vmem:[#allocation2 + $0x4f0] sm:$0xff] }
  0xd8   :  { %1102 = vmatmul.mubr.f32.gmra.mrb[22].mxu0 %v113_v25  ;;  %677 = vmatprep.mubr.f32.mxu1 %v212_v19  ;;  %v208_v25 = vld [vmem:[#allocation2 + $0x528] sm:$0xff]  ;;  %v209_v19 = vld [vmem:[#allocation2 + $0x530] sm:$0xff] }
  0xd9   :  { %1107 = vmatprep.mubr.f32.mxu0 %v120_v0  ;;  %v216_v0 = vld [vmem:[#allocation2 + $0x568] sm:$0xff] }
  0xdb   :  { %678 = vmatmul.mubr.f32.gmra.mrb[56].mxu1 %v211_v1  ;;  %v207_v1 = vld [vmem:[#allocation2 + $0x520] sm:$0xff] }
  0xdc   :  { %1108 = vmatmul.mubr.f32.gmra.mrb[24].mxu0 %v119_v44  ;;  %683 = vmatprep.mubr.f32.mxu1 %v218_v2  ;;  %v214_v44 = vld [vmem:[#allocation2 + $0x558] sm:$0xff]  ;;  %v215_v2 = vld [vmem:[#allocation2 + $0x560] sm:$0xff] }
  0xdd   :  { %1113 = vmatprep.mubr.f32.mxu0 %v126_v50  ;;  %v222_v50 = vld [vmem:[#allocation2 + $0x598] sm:$0xff] }
  0xdf   :  { %684 = vmatmul.mubr.f32.gmra.mrb[58].mxu1 %v217_v5  ;;  %v213_v5 = vld [vmem:[#allocation2 + $0x550] sm:$0xff] }
  0xe0   :  { %1114 = vmatmul.mubr.f32.gmra.mrb[26].mxu0 %v125_v30  ;;  %689 = vmatprep.mubr.f32.mxu1 %v224_v8  ;;  %v220_v30 = vld [vmem:[#allocation2 + $0x588] sm:$0xff]  ;;  %v221_v8 = vld [vmem:[#allocation2 + $0x590] sm:$0xff] }
  0xe1   :  { %1119 = vmatprep.mubr.f32.mxu0 %v132_v9  ;;  %v228_v9 = vld [vmem:[#allocation2 + $0x5c8] sm:$0xff] }
  0xe3   :  { %690 = vmatmul.mubr.f32.gmra.mrb[60].mxu1 %v223_v27  ;;  %v219_v27 = vld [vmem:[#allocation2 + $0x580] sm:$0xff] }
  0xe4   :  { %1120 = vmatmul.mubr.f32.gmra.mrb[28].mxu0 %v131_v10  ;;  %695 = vmatprep.mubr.f32.mxu1 %v230_v33  ;;  %v226_v10 = vld [vmem:[#allocation2 + $0x5b8] sm:$0xff]  ;;  %v227_v33 = vld [vmem:[#allocation2 + $0x5c0] sm:$0xff] }
  0xe5   :  { %1125 = vmatprep.mubr.f32.mxu0 %v138_v60  ;;  %v234_v60 = vld [vmem:[#allocation2 + $0x5f8] sm:$0xff] }
  0xe7   :  { %696 = vmatmul.mubr.f32.gmra.mrb[62].mxu1 %v229_v3  ;;  %v225_v3 = vld [vmem:[#allocation2 + $0x5b0] sm:$0xff] }
  0xe8   :  { %1126 = vmatmul.mubr.f32.gmra.mrb[30].mxu0 %v137_v11  ;;  %701 = vmatprep.mubr.f32.mxu1 %v236_v15  ;;  %v232_v11 = vld [vmem:[#allocation2 + $0x5e8] sm:$0xff]  ;;  %v233_v15 = vld [vmem:[#allocation2 + $0x5f0] sm:$0xff] }
  0xe9   :  { %1131 = vmatprep.mubr.f32.mxu0 %v144_v18  ;;  %v240_v18 = vld [vmem:[#allocation2 + $0x628] sm:$0xff] }
  0xeb   :  { %702 = vmatmul.mubr.f32.gmra.mrb[64].mxu1 %v235_v16  ;;  %v231_v16 = vld [vmem:[#allocation2 + $0x5e0] sm:$0xff] }
  0xec   :  { %868 = vmatprep.mubr.f32.mxu1 %v142_v23  ;;  %1132 = vmatmul.mubr.f32.gmra.mrb[32].mxu0 %v143_v20  ;;  %v238_v23 = vld [vmem:[#allocation2 + $0x618] sm:$0xff]  ;;  %v239_v20 = vld [vmem:[#allocation2 + $0x620] sm:$0xff] }
  0xed   :  { %1137 = vmatprep.mubr.f32.mxu0 %v150_v38  ;;  %v237_v38 = vld [vmem:[#allocation2 + $0x610] sm:$0xff] }
  0xef   :  { %869 = vmatmul.mubr.f32.vlgmr.msra.gmra.mrb[32].mxu1 %v141_v21 }
  0xf0   :  { %874 = vmatprep.mubr.f32.mxu1 %v148_v43  ;;  %1138 = vmatmul.mubr.f32.gmra.mrb[34].mxu0 %v149_v36 }
  0xf1   :  { %1143 = vmatprep.mubr.f32.mxu0 %v156_v41 }
  0xf3   :  { %875 = vmatmul.mubr.f32.gmra.mrb[34].mxu1 %v147_v42 }
  0xf4   :  { %880 = vmatprep.mubr.f32.mxu1 %v154_v22  ;;  %1144 = vmatmul.mubr.f32.gmra.mrb[36].mxu0 %v155_v47 }
  0xf5   :  { %1149 = vmatprep.mubr.f32.mxu0 %v162_v7 }
  0xf7   :  { %881 = vmatmul.mubr.f32.gmra.mrb[36].mxu1 %v153_v53 }
  0xf8   :  { %886 = vmatprep.mubr.f32.mxu1 %v160_v26  ;;  %1150 = vmatmul.mubr.f32.gmra.mrb[38].mxu0 %v161_v28 }
  0xf9   :  { %1155 = vmatprep.mubr.f32.mxu0 %v168_v29 }
  0xfb   :  { %887 = vmatmul.mubr.f32.gmra.mrb[38].mxu1 %v159_v31 }
  0xfc   :  { %892 = vmatprep.mubr.f32.mxu1 %v166_v34  ;;  %1156 = vmatmul.mubr.f32.gmra.mrb[40].mxu0 %v167_v51 }
  0xfd   :  { %1161 = vmatprep.mubr.f32.mxu0 %v174_v55 }
  0xff   :  { %893 = vmatmul.mubr.f32.gmra.mrb[40].mxu1 %v165_v35 }
 0x100   :  { %898 = vmatprep.mubr.f32.mxu1 %v172_v61  ;;  %1162 = vmatmul.mubr.f32.gmra.mrb[42].mxu0 %v173_v56 }
 0x101   :  { %1167 = vmatprep.mubr.f32.mxu0 %v180_v12 }
 0x103   :  { %899 = vmatmul.mubr.f32.gmra.mrb[42].mxu1 %v171_v37 }
 0x104   :  { %904 = vmatprep.mubr.f32.mxu1 %v178_v39  ;;  %1168 = vmatmul.mubr.f32.gmra.mrb[44].mxu0 %v179_v40 }
 0x105   :  { %1173 = vmatprep.mubr.f32.mxu0 %v186_v45 }
 0x107   :  { %905 = vmatmul.mubr.f32.gmra.mrb[44].mxu1 %v177_v46  ;;  %v435_v46 = vlaneseq }
 0x108   :  { %910 = vmatprep.mubr.f32.mxu1 %v184_v6  ;;  %1174 = vmatmul.mubr.f32.gmra.mrb[46].mxu0 %v185_v48 }
 0x109   :  { %1179 = vmatprep.mubr.f32.mxu0 %v192_v14  ;;  %v436_v14 = vshrl.u32 %v435_v46, 7 }
 0x10b   :  { %911 = vmatmul.mubr.f32.gmra.mrb[46].mxu1 %v183_v63 }
 0x10c   :  { %916 = vmatprep.mubr.f32.mxu1 %v190_v49  ;;  %1180 = vmatmul.mubr.f32.gmra.mrb[48].mxu0 %v191_v4  ;;  %v437_v4 = vsub.s32 0, %v436_v14 }
 0x10d   :  { %1185 = vmatprep.mubr.f32.mxu0 %v198_v52 }
 0x10f   :  { %917 = vmatmul.mubr.f32.gmra.mrb[48].mxu1 %v189_v17  ;;  %v433_v17 = vld [vmem:[%s2229_s2] sm:$0x3]  ;;  %s1891_s2 = smov [#allocation7]  }
 0x110   :  { %922 = vmatprep.mubr.f32.mxu1 %v196_v54  ;;  %1186 = vmatmul.mubr.f32.gmra.mrb[50].mxu0 %v197_v57  ;;  %v441_v54 = vsub.s32 1, %v436_v14  ;;  %s1371_s13 = sshll.u32 %s1891_s2, 4  ;;  %s1372_s13 = int_to_ptr.vmem [resolvable:$true] %s1371_s13 }
 0x111   :  { %1191 = vmatprep.mubr.f32.mxu0 %v204_v24  ;;  %v2114_v24 = vrot.slane %v433_v17, %v437_v4  ;;  %s1857_s14 = scalar_lea.vmem %s1372_s13, 8448  ;;  %p1862_p3 = scmp.lt.s32.totalorder %s1372_s13, %s1372_s13 }
 0x112   :  { %p1858_p2 = scmp.ne.s32.totalorder %s1372_s13, %s1857_s14  ;;  %p1863_p4 = scmp.lt.s32.totalorder %s1857_s14, %s1857_s14 }
 0x113   :  { %923 = vmatmul.mubr.f32.gmra.mrb[50].mxu1 %v195_v58 }
 0x114   :  { %928 = vmatprep.mubr.f32.mxu1 %v202_v32  ;;  %1192 = vmatmul.mubr.f32.gmra.mrb[52].mxu0 %v203_v59  ;;  %v2118_v32 = vrot.slane %v433_v17, %v441_v54  ;;  %p1864_p5 = por %p1863_p4, %p1862_p3 }
 0x115   :  { %1197 = vmatprep.mubr.f32.mxu0 %v210_v62 }
 0x116   :  { %p1865_p6 = pnand %p1864_p5, %p1858_p2 }
 0x117   :  { %929 = vmatmul.mubr.f32.gmra.mrb[52].mxu1 %v201_v13 }
 0x118   :  { %934 = vmatprep.mubr.f32.mxu1 %v208_v25  ;;  %1198 = vmatmul.mubr.f32.gmra.mrb[54].mxu0 %v209_v19 }
 0x119   :  { %1203 = vmatprep.mubr.f32.mxu0 %v216_v0 }
 0x11b   :  { %935 = vmatmul.mubr.f32.gmra.mrb[54].mxu1 %v207_v1 }
 0x11c   :  { %940 = vmatprep.mubr.f32.mxu1 %v214_v44  ;;  %1204 = vmatmul.mubr.f32.gmra.mrb[56].mxu0 %v215_v2 }
 0x11d   :  { %1209 = vmatprep.mubr.f32.mxu0 %v222_v50 }
 0x11f   :  { %941 = vmatmul.mubr.f32.gmra.mrb[56].mxu1 %v213_v5 }
 0x120   :  { %946 = vmatprep.mubr.f32.mxu1 %v220_v30  ;;  %1210 = vmatmul.mubr.f32.gmra.mrb[58].mxu0 %v221_v8 }
 0x121   :  { %1215 = vmatprep.mubr.f32.mxu0 %v228_v9 }
 0x123   :  { %947 = vmatmul.mubr.f32.gmra.mrb[58].mxu1 %v219_v27 }
 0x124   :  { %952 = vmatprep.mubr.f32.mxu1 %v226_v10  ;;  %1216 = vmatmul.mubr.f32.gmra.mrb[60].mxu0 %v227_v33 }
 0x125   :  { %1221 = vmatprep.mubr.f32.mxu0 %v234_v60 }
 0x127   :  { %953 = vmatmul.mubr.f32.gmra.mrb[60].mxu1 %v225_v3 }
 0x128   :  { %958 = vmatprep.mubr.f32.mxu1 %v232_v11  ;;  %1222 = vmatmul.mubr.f32.gmra.mrb[62].mxu0 %v233_v15 }
 0x129   :  { %1227 = vmatprep.mubr.f32.mxu0 %v240_v18 }
 0x12b   :  { %959 = vmatmul.mubr.f32.gmra.mrb[62].mxu1 %v231_v16 }
 0x12c   :  { %964 = vmatprep.mubr.f32.mxu1 %v238_v23  ;;  %1228 = vmatmul.mubr.f32.gmra.mrb[64].mxu0 %v239_v20 }
 0x12f   :  { %965 = vmatmul.mubr.f32.gmra.mrb[64].mxu1 %v237_v38 }
 0x13e   :  { %v511_v21 = vpop.f32.mrb[0].mxu1 }
 0x13f   :  { %v513_v43 = vpop.f32.mrb[1].mxu1  ;;  %v512_v62 = vadd.f32 %v511_v21, %v2114_v24 }
 0x140   :  { %v514_v13 = vadd.f32 %v513_v43, %v2118_v32 }
 0x142   :  { %v517_v36 = vpop.f32.mrb[2].mxu1 }
 0x143   :  { %v519_v41 = vpop.f32.mrb[3].mxu1  ;;  %v518_v44 = vadd.f32 %v517_v36, %v2114_v24 }
 0x144   :  { %v520_v50 = vadd.f32 %v519_v41, %v2118_v32 }
 0x146   :  { %v523_v42 = vpop.f32.mrb[4].mxu1 }
 0x147   :  { %v525_v22 = vpop.f32.mrb[5].mxu1  ;;  %v524_v10 = vadd.f32 %v523_v42, %v2114_v24 }
 0x148   :  { %v526_v60 = vadd.f32 %v525_v22, %v2118_v32 }
 0x14a   :  { %v529_v47 = vpop.f32.mrb[6].mxu1 }
 0x14b   :  { %v531_v7 = vpop.f32.mrb[7].mxu1  ;;  %v530_v23 = vadd.f32 %v529_v47, %v2114_v24 }
 0x14c   :  { %v532_v38 = vadd.f32 %v531_v7, %v2118_v32 }
 0x14e   :  { %v2067_v53 = vpop.f32.mrb[8].mxu1 }
 0x14f   :  { %v2069_v26 = vpop.f32.mrb[9].mxu1  ;;  %v536_v22 = vadd.f32 %v2067_v53, %v2114_v24 }
 0x150   :  { %v538_v14 = vadd.f32 %v2069_v26, %v2118_v32 }
 0x152   :  { %v2071_v28 = vpop.f32.mrb[10].mxu1 }
 0x153   :  { %v2073_v29 = vpop.f32.mrb[11].mxu1 }
 0x156   :  { %v2075_v31 = vpop.f32.mrb[12].mxu1 }
 0x157   :  { %v2077_v34 = vpop.f32.mrb[13].mxu1 }
 0x15a   :  { %v2079_v51 = vpop.f32.mrb[14].mxu1 }
 0x15b   :  { %v2081_v55 = vpop.f32.mrb[15].mxu1 }
 0x15e   :  { %v2083_v35 = vpop.f32.mrb[16].mxu1 }
 0x15f   :  { %v2085_v61 = vpop.f32.mrb[17].mxu1 }
 0x162   :  { %v2087_v56 = vpop.f32.mrb[18].mxu1 }
 0x163   :  { %v2089_v12 = vpop.f32.mrb[19].mxu1 }
 0x166   :  { %v2091_v37 = vpop.f32.mrb[20].mxu1 }
 0x167   :  { %v2093_v39 = vpop.f32.mrb[21].mxu1 }
 0x16a   :  { %v2095_v40 = vpop.f32.mrb[22].mxu1 }
 0x16b   :  { %v2097_v45 = vpop.f32.mrb[23].mxu1 }
 0x16e   :  { %v2099_v6 = vpop.f32.mrb[24].mxu1 }
 0x16f   :  { %v2101_v48 = vpop.f32.mrb[25].mxu1 }
 0x172   :  { %v2103_v63 = vpop.f32.mrb[26].mxu1 }
 0x173   :  { %v2105_v49 = vpop.f32.mrb[27].mxu1 }
 0x176   :  { %v2107_v52 = vpop.f32.mrb[28].mxu1 }
 0x177   :  { %v2112_v57 = vpop.f32.mrb[29].mxu1 }
 0x17a   :  { %v2116_v58 = vpop.f32.mrb[30].mxu1 }
 0x17b   :  { %v2120_v59 = vpop.f32.mrb[31].mxu1 }
 0x17f   :  { %v1037_v25 = vpop.f32.mrb[0].mxu0 }
 0x180   :  { %v1609_v19 = vadd.f32 %v1037_v25, %v512_v62  ;;  %v1039_v0 = vpop.f32.mrb[1].mxu0  ;;  %v542_v62 = vadd.f32 %v2071_v28, %v2114_v24  ;;  %v544_v25 = vadd.f32 %v2073_v29, %v2118_v32 }
 0x181   :  { %v1611_v1 = vadd.f32 %v1039_v0, %v514_v13 }
 0x182   :  { %v1234_v2 = vmax.f32 %v1609_v19, 0.0 }
 0x183   :  { %v1235_v5 = vmax.f32 %v1611_v1, 0.0  ;;  %v1043_v30 = vpop.f32.mrb[2].mxu0 }
 0x184   :  { %1300 = vst [vmem:[#allocation7] sm:$0xff] %v1234_v2  ;;  %v1613_v8 = vadd.f32 %v1043_v30, %v518_v44  ;;  %v1045_v9 = vpop.f32.mrb[3].mxu0  ;;  %v548_v44 = vadd.f32 %v2075_v31, %v2114_v24 }
 0x185   :  { %1301 = vst [vmem:[#allocation7 + $0x8] sm:$0xff] %v1235_v5  ;;  %v1615_v27 = vadd.f32 %v1045_v9, %v520_v50  ;;  %v550_v50 = vadd.f32 %v2077_v34, %v2118_v32  ;;  %v554_v9 = vadd.f32 %v2079_v51, %v2114_v24 }
 0x186   :  { %v1236_v33 = vmax.f32 %v1613_v8, 0.0 }
 0x187   :  { %v1237_v3 = vmax.f32 %v1615_v27, 0.0  ;;  %v1049_v11 = vpop.f32.mrb[4].mxu0 }
 0x188   :  { %1302 = vst [vmem:[#allocation7 + $0x10] sm:$0xff] %v1236_v33  ;;  %v1617_v15 = vadd.f32 %v1049_v11, %v524_v10  ;;  %v1051_v18 = vpop.f32.mrb[5].mxu0  ;;  %v556_v10 = vadd.f32 %v2081_v55, %v2118_v32  ;;  %v560_v11 = vadd.f32 %v2083_v35, %v2114_v24 }
 0x189   :  { %1303 = vst [vmem:[#allocation7 + $0x18] sm:$0xff] %v1237_v3  ;;  %v1619_v16 = vadd.f32 %v1051_v18, %v526_v60  ;;  %v562_v18 = vadd.f32 %v2085_v61, %v2118_v32 }
 0x18a   :  { %v1238_v20 = vmax.f32 %v1617_v15, 0.0 }
 0x18b   :  { %v1239_v21 = vmax.f32 %v1619_v16, 0.0  ;;  %v1055_v43 = vpop.f32.mrb[6].mxu0 }
 0x18c   :  { %1304 = vst [vmem:[#allocation7 + $0x20] sm:$0xff] %v1238_v20  ;;  %v1621_v36 = vadd.f32 %v1055_v43, %v530_v23  ;;  %v1057_v41 = vpop.f32.mrb[7].mxu0  ;;  %v568_v43 = vadd.f32 %v2089_v12, %v2118_v32 }
 0x18d   :  { %1305 = vst [vmem:[#allocation7 + $0x28] sm:$0xff] %v1239_v21  ;;  %v1623_v42 = vadd.f32 %v1057_v41, %v532_v38  ;;  %v566_v38 = vadd.f32 %v2087_v56, %v2114_v24 }
 0x18e   :  { %v1240_v46 = vmax.f32 %v1621_v36, 0.0 }
 0x18f   :  { %v1241_v4 = vmax.f32 %v1623_v42, 0.0  ;;  %v1061_v17 = vpop.f32.mrb[8].mxu0 }
 0x190   :  { %1306 = vst [vmem:[#allocation7 + $0x30] sm:$0xff] %v1240_v46  ;;  %v1625_v47 = vadd.f32 %v1061_v17, %v536_v22  ;;  %v1063_v54 = vpop.f32.mrb[9].mxu0  ;;  %v572_v22 = vadd.f32 %v2091_v37, %v2114_v24 }
 0x191   :  { %1307 = vst [vmem:[#allocation7 + $0x38] sm:$0xff] %v1241_v4  ;;  %v1627_v7 = vadd.f32 %v1063_v54, %v538_v14  ;;  %v574_v14 = vadd.f32 %v2093_v39, %v2118_v32  ;;  %v578_v54 = vadd.f32 %v2095_v40, %v2114_v24 }
 0x192   :  { %v1242_v13 = vmax.f32 %v1625_v47, 0.0 }
 0x193   :  { %v1243_v19 = vmax.f32 %v1627_v7, 0.0  ;;  %v1067_v53 = vpop.f32.mrb[10].mxu0 }
 0x194   :  { %1308 = vst [vmem:[#allocation7 + $0x40] sm:$0xff] %v1242_v13  ;;  %v1629_v0 = vadd.f32 %v1067_v53, %v542_v62  ;;  %v1069_v1 = vpop.f32.mrb[11].mxu0  ;;  %v580_v62 = vadd.f32 %v2097_v45, %v2118_v32  ;;  %v584_v53 = vadd.f32 %v2099_v6, %v2114_v24 }
 0x195   :  { %1309 = vst [vmem:[#allocation7 + $0x48] sm:$0xff] %v1243_v19  ;;  %v1631_v26 = vadd.f32 %v1069_v1, %v544_v25  ;;  %v586_v1 = vadd.f32 %v2101_v48, %v2118_v32 }
 0x196   :  { %v1244_v2 = vmax.f32 %v1629_v0, 0.0 }
 0x197   :  { %v1245_v5 = vmax.f32 %v1631_v26, 0.0  ;;  %v1073_v28 = vpop.f32.mrb[12].mxu0 }
 0x198   :  { %1310 = vst [vmem:[#allocation7 + $0x50] sm:$0xff] %v1244_v2  ;;  %v1633_v30 = vadd.f32 %v1073_v28, %v548_v44  ;;  %v1075_v8 = vpop.f32.mrb[13].mxu0  ;;  %v592_v28 = vadd.f32 %v2105_v49, %v2118_v32 }
 0x199   :  { %1311 = vst [vmem:[#allocation7 + $0x58] sm:$0xff] %v1245_v5  ;;  %v1635_v29 = vadd.f32 %v1075_v8, %v550_v50  ;;  %v590_v50 = vadd.f32 %v2103_v63, %v2114_v24 }
 0x19a   :  { %v1246_v27 = vmax.f32 %v1633_v30, 0.0 }
 0x19b   :  { %v1247_v33 = vmax.f32 %v1635_v29, 0.0  ;;  %v1079_v31 = vpop.f32.mrb[14].mxu0 }
 0x19c   :  { %1312 = vst [vmem:[#allocation7 + $0x60] sm:$0xff] %v1246_v27  ;;  %v1637_v60 = vadd.f32 %v1079_v31, %v554_v9  ;;  %v1081_v3 = vpop.f32.mrb[15].mxu0  ;;  %v596_v9 = vadd.f32 %v2107_v52, %v2114_v24 }
 0x19d   :  { %1313 = vst [vmem:[#allocation7 + $0x68] sm:$0xff] %v1247_v33  ;;  %v1639_v34 = vadd.f32 %v1081_v3, %v556_v10  ;;  %v598_v10 = vadd.f32 %v2112_v57, %v2118_v32  ;;  %v602_v3 = vadd.f32 %v2116_v58, %v2114_v24 }
 0x19e   :  { %v1248_v15 = vmax.f32 %v1637_v60, 0.0 }
 0x19f   :  { %v1249_v16 = vmax.f32 %v1639_v34, 0.0  ;;  %v1085_v51 = vpop.f32.mrb[16].mxu0 }
 0x1a0   :  { %1314 = vst [vmem:[#allocation7 + $0x70] sm:$0xff] %v1248_v15  ;;  %v1641_v23 = vadd.f32 %v1085_v51, %v560_v11  ;;  %v1087_v20 = vpop.f32.mrb[17].mxu0  ;;  %v604_v11 = vadd.f32 %v2120_v59, %v2118_v32 }
 0x1a1   :  { %1315 = vst [vmem:[#allocation7 + $0x78] sm:$0xff] %v1249_v16  ;;  %v1643_v55 = vadd.f32 %v1087_v20, %v562_v18 }
 0x1a2   :  { %v1250_v21 = vmax.f32 %v1641_v23, 0.0 }
 0x1a3   :  { %v1251_v36 = vmax.f32 %v1643_v55, 0.0  ;;  %v1091_v35 = vpop.f32.mrb[18].mxu0 }
 0x1a4   :  { %1316 = vst [vmem:[#allocation7 + $0x80] sm:$0xff] %v1250_v21  ;;  %v1645_v41 = vadd.f32 %v1091_v35, %v566_v38  ;;  %v1093_v42 = vpop.f32.mrb[19].mxu0 }
 0x1a5   :  { %1317 = vst [vmem:[#allocation7 + $0x88] sm:$0xff] %v1251_v36  ;;  %v1647_v61 = vadd.f32 %v1093_v42, %v568_v43 }
 0x1a6   :  { %v1252_v46 = vmax.f32 %v1645_v41, 0.0 }
 0x1a7   :  { %v1253_v4 = vmax.f32 %v1647_v61, 0.0  ;;  %v1097_v56 = vpop.f32.mrb[20].mxu0 }
 0x1a8   :  { %1318 = vst [vmem:[#allocation7 + $0x90] sm:$0xff] %v1252_v46  ;;  %v1649_v17 = vadd.f32 %v1097_v56, %v572_v22  ;;  %v1099_v47 = vpop.f32.mrb[21].mxu0 }
 0x1a9   :  { %1319 = vst [vmem:[#allocation7 + $0x98] sm:$0xff] %v1253_v4  ;;  %v1651_v12 = vadd.f32 %v1099_v47, %v574_v14 }
 0x1aa   :  { %v1254_v7 = vmax.f32 %v1649_v17, 0.0 }
 0x1ab   :  { %v1255_v13 = vmax.f32 %v1651_v12, 0.0  ;;  %v1103_v37 = vpop.f32.mrb[22].mxu0 }
 0x1ac   :  { %1320 = vst [vmem:[#allocation7 + $0xa0] sm:$0xff] %v1254_v7  ;;  %v1653_v25 = vadd.f32 %v1103_v37, %v578_v54  ;;  %v1105_v19 = vpop.f32.mrb[23].mxu0 }
 0x1ad   :  { %1321 = vst [vmem:[#allocation7 + $0xa8] sm:$0xff] %v1255_v13  ;;  %v1655_v39 = vadd.f32 %v1105_v19, %v580_v62 }
 0x1ae   :  { %v1256_v0 = vmax.f32 %v1653_v25, 0.0 }
 0x1af   :  { %v1257_v26 = vmax.f32 %v1655_v39, 0.0  ;;  %v1109_v40 = vpop.f32.mrb[24].mxu0 }
 0x1b0   :  { %1322 = vst [vmem:[#allocation7 + $0xb0] sm:$0xff] %v1256_v0  ;;  %v1657_v44 = vadd.f32 %v1109_v40, %v584_v53  ;;  %v1111_v2 = vpop.f32.mrb[25].mxu0 }
 0x1b1   :  { %1323 = vst [vmem:[#allocation7 + $0xb8] sm:$0xff] %v1257_v26  ;;  %v1659_v45 = vadd.f32 %v1111_v2, %v586_v1 }
 0x1b2   :  { %v1258_v5 = vmax.f32 %v1657_v44, 0.0 }
 0x1b3   :  { %v1259_v30 = vmax.f32 %v1659_v45, 0.0  ;;  %v1115_v6 = vpop.f32.mrb[26].mxu0 }
 0x1b4   :  { %1324 = vst [vmem:[#allocation7 + $0xc0] sm:$0xff] %v1258_v5  ;;  %v1661_v8 = vadd.f32 %v1115_v6, %v590_v50  ;;  %v1117_v29 = vpop.f32.mrb[27].mxu0 }
 0x1b5   :  { %1325 = vst [vmem:[#allocation7 + $0xc8] sm:$0xff] %v1259_v30  ;;  %v1663_v48 = vadd.f32 %v1117_v29, %v592_v28 }
 0x1b6   :  { %v1260_v27 = vmax.f32 %v1661_v8, 0.0 }
 0x1b7   :  { %v1261_v33 = vmax.f32 %v1663_v48, 0.0  ;;  %v1121_v63 = vpop.f32.mrb[28].mxu0 }
 0x1b8   :  { %1326 = vst [vmem:[#allocation7 + $0xd0] sm:$0xff] %v1260_v27  ;;  %v1665_v31 = vadd.f32 %v1121_v63, %v596_v9  ;;  %v1123_v60 = vpop.f32.mrb[29].mxu0 }
 0x1b9   :  { %1327 = vst [vmem:[#allocation7 + $0xd8] sm:$0xff] %v1261_v33  ;;  %v1667_v49 = vadd.f32 %v1123_v60, %v598_v10 }
 0x1ba   :  { %v1262_v34 = vmax.f32 %v1665_v31, 0.0 }
 0x1bb   :  { %v1263_v15 = vmax.f32 %v1667_v49, 0.0  ;;  %v1127_v52 = vpop.f32.mrb[30].mxu0 }
 0x1bc   :  { %1328 = vst [vmem:[#allocation7 + $0xe0] sm:$0xff] %v1262_v34  ;;  %v1669_v18 = vadd.f32 %v1127_v52, %v602_v3  ;;  %v1129_v16 = vpop.f32.mrb[31].mxu0 }
 0x1bd   :  { %1329 = vst [vmem:[#allocation7 + $0xe8] sm:$0xff] %v1263_v15  ;;  %v1671_v57 = vadd.f32 %v1129_v16, %v604_v11 }
 0x1be   :  { %v1264_v51 = vmax.f32 %v1669_v18, 0.0 }
 0x1bf   :  { %v1265_v23 = vmax.f32 %v1671_v57, 0.0  ;;  %v1133_v20 = vpop.f32.mrb[32].mxu0 }
 0x1c0   :  { %1330 = vst [vmem:[#allocation7 + $0xf0] sm:$0xff] %v1264_v51  ;;  %v1135_v55 = vpop.f32.mrb[33].mxu0 }
 0x1c1   :  { %1331 = vst [vmem:[#allocation7 + $0xf8] sm:$0xff] %v1265_v23 }
 0x1c2   :  { %v870_v38 = vpop.f32.mrb[32].mxu1 }
 0x1c3   :  { %v1672_v58 = vadd.f32 %v870_v38, %v2114_v24  ;;  %v872_v21 = vpop.f32.mrb[33].mxu1  ;;  %v1139_v43 = vpop.f32.mrb[34].mxu0 }
 0x1c4   :  { %v1674_v59 = vadd.f32 %v872_v21, %v2118_v32  ;;  %v1141_v36 = vpop.f32.mrb[35].mxu0 }
 0x1c5   :  { %v1673_v35 = vadd.f32 %v1672_v58, %v1133_v20 }
 0x1c6   :  { %v1675_v41 = vadd.f32 %v1674_v59, %v1135_v55  ;;  %v876_v42 = vpop.f32.mrb[34].mxu1 }
 0x1c7   :  { %v1266_v61 = vmax.f32 %v1673_v35, 0.0  ;;  %v1676_v22 = vadd.f32 %v876_v42, %v2114_v24  ;;  %v878_v46 = vpop.f32.mrb[35].mxu1  ;;  %v1145_v14 = vpop.f32.mrb[36].mxu0 }
 0x1c8   :  { %v1267_v4 = vmax.f32 %v1675_v41, 0.0  ;;  %v1678_v56 = vadd.f32 %v878_v46, %v2118_v32  ;;  %v1147_v17 = vpop.f32.mrb[37].mxu0 }
 0x1c9   :  { %1332 = vst [vmem:[#allocation7 + $0x100] sm:$0xff] %v1266_v61  ;;  %v1677_v47 = vadd.f32 %v1676_v22, %v1139_v43 }
 0x1ca   :  { %1333 = vst [vmem:[#allocation7 + $0x108] sm:$0xff] %v1267_v4  ;;  %v1679_v12 = vadd.f32 %v1678_v56, %v1141_v36  ;;  %v882_v54 = vpop.f32.mrb[36].mxu1 }
 0x1cb   :  { %v1268_v7 = vmax.f32 %v1677_v47, 0.0  ;;  %v1680_v62 = vadd.f32 %v882_v54, %v2114_v24  ;;  %v884_v13 = vpop.f32.mrb[37].mxu1  ;;  %v1151_v37 = vpop.f32.mrb[38].mxu0 }
 0x1cc   :  { %v1269_v25 = vmax.f32 %v1679_v12, 0.0  ;;  %v1682_v19 = vadd.f32 %v884_v13, %v2118_v32  ;;  %v1153_v39 = vpop.f32.mrb[39].mxu0 }
 0x1cd   :  { %1334 = vst [vmem:[#allocation7 + $0x110] sm:$0xff] %v1268_v7  ;;  %v1681_v53 = vadd.f32 %v1680_v62, %v1145_v14 }
 0x1ce   :  { %1335 = vst [vmem:[#allocation7 + $0x118] sm:$0xff] %v1269_v25  ;;  %v1683_v0 = vadd.f32 %v1682_v19, %v1147_v17  ;;  %v888_v1 = vpop.f32.mrb[38].mxu1 }
 0x1cf   :  { %v1270_v26 = vmax.f32 %v1681_v53, 0.0  ;;  %v1684_v40 = vadd.f32 %v888_v1, %v2114_v24  ;;  %v890_v44 = vpop.f32.mrb[39].mxu1  ;;  %v1157_v2 = vpop.f32.mrb[40].mxu0 }
 0x1d0   :  { %v1271_v45 = vmax.f32 %v1683_v0, 0.0  ;;  %v1686_v50 = vadd.f32 %v890_v44, %v2118_v32  ;;  %v1159_v5 = vpop.f32.mrb[41].mxu0 }
 0x1d1   :  { %1336 = vst [vmem:[#allocation7 + $0x120] sm:$0xff] %v1270_v26  ;;  %v1685_v28 = vadd.f32 %v1684_v40, %v1151_v37 }
 0x1d2   :  { %1337 = vst [vmem:[#allocation7 + $0x128] sm:$0xff] %v1271_v45  ;;  %v1687_v30 = vadd.f32 %v1686_v50, %v1153_v39  ;;  %v894_v6 = vpop.f32.mrb[40].mxu1 }
 0x1d3   :  { %v1272_v8 = vmax.f32 %v1685_v28, 0.0  ;;  %v1688_v29 = vadd.f32 %v894_v6, %v2114_v24  ;;  %v896_v48 = vpop.f32.mrb[41].mxu1  ;;  %v1163_v9 = vpop.f32.mrb[42].mxu0 }
 0x1d4   :  { %v1273_v27 = vmax.f32 %v1687_v30, 0.0  ;;  %v1690_v10 = vadd.f32 %v896_v48, %v2118_v32  ;;  %v1165_v33 = vpop.f32.mrb[43].mxu0 }
 0x1d5   :  { %1338 = vst [vmem:[#allocation7 + $0x130] sm:$0xff] %v1272_v8  ;;  %v1689_v63 = vadd.f32 %v1688_v29, %v1157_v2 }
 0x1d6   :  { %1339 = vst [vmem:[#allocation7 + $0x138] sm:$0xff] %v1273_v27  ;;  %v1691_v31 = vadd.f32 %v1690_v10, %v1159_v5  ;;  %v900_v60 = vpop.f32.mrb[42].mxu1 }
 0x1d7   :  { %v1274_v49 = vmax.f32 %v1689_v63, 0.0  ;;  %v1692_v3 = vadd.f32 %v900_v60, %v2114_v24  ;;  %v902_v34 = vpop.f32.mrb[43].mxu1  ;;  %v1169_v11 = vpop.f32.mrb[44].mxu0 }
 0x1d8   :  { %v1275_v15 = vmax.f32 %v1691_v31, 0.0  ;;  %v1694_v52 = vadd.f32 %v902_v34, %v2118_v32  ;;  %v1171_v18 = vpop.f32.mrb[45].mxu0 }
 0x1d9   :  { %1340 = vst [vmem:[#allocation7 + $0x140] sm:$0xff] %v1274_v49  ;;  %v1693_v16 = vadd.f32 %v1692_v3, %v1163_v9 }
 0x1da   :  { %1341 = vst [vmem:[#allocation7 + $0x148] sm:$0xff] %v1275_v15  ;;  %v1695_v57 = vadd.f32 %v1694_v52, %v1165_v33  ;;  %v906_v51 = vpop.f32.mrb[44].mxu1 }
 0x1db   :  { %v1276_v23 = vmax.f32 %v1693_v16, 0.0  ;;  %v1696_v20 = vadd.f32 %v906_v51, %v2114_v24  ;;  %v908_v55 = vpop.f32.mrb[45].mxu1  ;;  %v1175_v38 = vpop.f32.mrb[46].mxu0 }
 0x1dc   :  { %v1277_v58 = vmax.f32 %v1695_v57, 0.0  ;;  %v1698_v21 = vadd.f32 %v908_v55, %v2118_v32  ;;  %v1177_v43 = vpop.f32.mrb[47].mxu0 }
 0x1dd   :  { %1342 = vst [vmem:[#allocation7 + $0x150] sm:$0xff] %v1276_v23  ;;  %v1697_v59 = vadd.f32 %v1696_v20, %v1169_v11 }
 0x1de   :  { %1343 = vst [vmem:[#allocation7 + $0x158] sm:$0xff] %v1277_v58  ;;  %v1699_v36 = vadd.f32 %v1698_v21, %v1171_v18  ;;  %v912_v35 = vpop.f32.mrb[46].mxu1 }
 0x1df   :  { %v1278_v41 = vmax.f32 %v1697_v59, 0.0  ;;  %v1700_v42 = vadd.f32 %v912_v35, %v2114_v24  ;;  %v914_v61 = vpop.f32.mrb[47].mxu1  ;;  %v1181_v22 = vpop.f32.mrb[48].mxu0 }
 0x1e0   :  { %v1279_v46 = vmax.f32 %v1699_v36, 0.0  ;;  %v1702_v14 = vadd.f32 %v914_v61, %v2118_v32  ;;  %v1183_v4 = vpop.f32.mrb[49].mxu0 }
 0x1e1   :  { %1344 = vst [vmem:[#allocation7 + $0x160] sm:$0xff] %v1278_v41  ;;  %v1701_v56 = vadd.f32 %v1700_v42, %v1175_v38 }
 0x1e2   :  { %1345 = vst [vmem:[#allocation7 + $0x168] sm:$0xff] %v1279_v46  ;;  %v1703_v17 = vadd.f32 %v1702_v14, %v1177_v43  ;;  %v918_v47 = vpop.f32.mrb[48].mxu1 }
 0x1e3   :  { %v1280_v12 = vmax.f32 %v1701_v56, 0.0  ;;  %v1704_v54 = vadd.f32 %v918_v47, %v2114_v24  ;;  %v920_v7 = vpop.f32.mrb[49].mxu1  ;;  %v1187_v62 = vpop.f32.mrb[50].mxu0 }
 0x1e4   :  { %v1281_v13 = vmax.f32 %v1703_v17, 0.0  ;;  %v1706_v37 = vadd.f32 %v920_v7, %v2118_v32  ;;  %v1189_v25 = vpop.f32.mrb[51].mxu0 }
 0x1e5   :  { %1346 = vst [vmem:[#allocation7 + $0x170] sm:$0xff] %v1280_v12  ;;  %v1705_v19 = vadd.f32 %v1704_v54, %v1181_v22 }
 0x1e6   :  { %1347 = vst [vmem:[#allocation7 + $0x178] sm:$0xff] %v1281_v13  ;;  %v1707_v39 = vadd.f32 %v1706_v37, %v1183_v4  ;;  %v924_v53 = vpop.f32.mrb[50].mxu1 }
 0x1e7   :  { %v1282_v0 = vmax.f32 %v1705_v19, 0.0  ;;  %v1708_v1 = vadd.f32 %v924_v53, %v2114_v24  ;;  %v926_v26 = vpop.f32.mrb[51].mxu1  ;;  %v1193_v40 = vpop.f32.mrb[52].mxu0 }
 0x1e8   :  { %v1283_v44 = vmax.f32 %v1707_v39, 0.0  ;;  %v1710_v2 = vadd.f32 %v926_v26, %v2118_v32  ;;  %v1195_v45 = vpop.f32.mrb[53].mxu0 }
 0x1e9   :  { %1348 = vst [vmem:[#allocation7 + $0x180] sm:$0xff] %v1282_v0  ;;  %v1709_v50 = vadd.f32 %v1708_v1, %v1187_v62 }
 0x1ea   :  { %1349 = vst [vmem:[#allocation7 + $0x188] sm:$0xff] %v1283_v44  ;;  %v1711_v5 = vadd.f32 %v1710_v2, %v1189_v25  ;;  %v930_v28 = vpop.f32.mrb[52].mxu1 }
 0x1eb   :  { %v1284_v30 = vmax.f32 %v1709_v50, 0.0  ;;  %v1712_v6 = vadd.f32 %v930_v28, %v2114_v24  ;;  %v932_v8 = vpop.f32.mrb[53].mxu1  ;;  %v1199_v29 = vpop.f32.mrb[54].mxu0 }
 0x1ec   :  { %v1285_v48 = vmax.f32 %v1711_v5, 0.0  ;;  %v1714_v9 = vadd.f32 %v932_v8, %v2118_v32  ;;  %v1201_v27 = vpop.f32.mrb[55].mxu0 }
 0x1ed   :  { %1350 = vst [vmem:[#allocation7 + $0x190] sm:$0xff] %v1284_v30  ;;  %v1713_v10 = vadd.f32 %v1712_v6, %v1193_v40 }
 0x1ee   :  { %1351 = vst [vmem:[#allocation7 + $0x198] sm:$0xff] %v1285_v48  ;;  %v1715_v33 = vadd.f32 %v1714_v9, %v1195_v45  ;;  %v936_v63 = vpop.f32.mrb[54].mxu1 }
 0x1ef   :  { %v1286_v31 = vmax.f32 %v1713_v10, 0.0  ;;  %v1716_v60 = vadd.f32 %v936_v63, %v2114_v24  ;;  %v938_v49 = vpop.f32.mrb[55].mxu1  ;;  %v1205_v3 = vpop.f32.mrb[56].mxu0 }
 0x1f0   :  { %v1287_v34 = vmax.f32 %v1715_v33, 0.0  ;;  %v1718_v11 = vadd.f32 %v938_v49, %v2118_v32  ;;  %v1207_v15 = vpop.f32.mrb[57].mxu0 }
 0x1f1   :  { %1352 = vst [vmem:[#allocation7 + $0x1a0] sm:$0xff] %v1286_v31  ;;  %v1717_v52 = vadd.f32 %v1716_v60, %v1199_v29 }
 0x1f2   :  { %1353 = vst [vmem:[#allocation7 + $0x1a8] sm:$0xff] %v1287_v34  ;;  %v1719_v18 = vadd.f32 %v1718_v11, %v1201_v27  ;;  %v942_v16 = vpop.f32.mrb[56].mxu1 }
 0x1f3   :  { %v1288_v57 = vmax.f32 %v1717_v52, 0.0  ;;  %v1720_v51 = vadd.f32 %v942_v16, %v2114_v24  ;;  %v944_v23 = vpop.f32.mrb[57].mxu1  ;;  %v1211_v20 = vpop.f32.mrb[58].mxu0 }
 0x1f4   :  { %v1289_v55 = vmax.f32 %v1719_v18, 0.0  ;;  %v1722_v38 = vadd.f32 %v944_v23, %v2118_v32  ;;  %v1213_v58 = vpop.f32.mrb[59].mxu0 }
 0x1f5   :  { %1354 = vst [vmem:[#allocation7 + $0x1b0] sm:$0xff] %v1288_v57  ;;  %v1721_v21 = vadd.f32 %v1720_v51, %v1205_v3 }
 0x1f6   :  { %1355 = vst [vmem:[#allocation7 + $0x1b8] sm:$0xff] %v1289_v55  ;;  %v1723_v43 = vadd.f32 %v1722_v38, %v1207_v15  ;;  %v948_v59 = vpop.f32.mrb[58].mxu1 }
 0x1f7   :  { %v1290_v36 = vmax.f32 %v1721_v21, 0.0  ;;  %v1724_v35 = vadd.f32 %v948_v59, %v2114_v24  ;;  %v950_v41 = vpop.f32.mrb[59].mxu1  ;;  %v1217_v42 = vpop.f32.mrb[60].mxu0 }
 0x1f8   :  { %v1291_v61 = vmax.f32 %v1723_v43, 0.0  ;;  %v1726_v22 = vadd.f32 %v950_v41, %v2118_v32  ;;  %v1219_v46 = vpop.f32.mrb[61].mxu0 }
 0x1f9   :  { %1356 = vst [vmem:[#allocation7 + $0x1c0] sm:$0xff] %v1290_v36  ;;  %v1725_v14 = vadd.f32 %v1724_v35, %v1211_v20 }
 0x1fa   :  { %1357 = vst [vmem:[#allocation7 + $0x1c8] sm:$0xff] %v1291_v61  ;;  %v1727_v4 = vadd.f32 %v1726_v22, %v1213_v58  ;;  %v954_v56 = vpop.f32.mrb[60].mxu1 }
 0x1fb   :  { %v1292_v17 = vmax.f32 %v1725_v14, 0.0  ;;  %v1728_v47 = vadd.f32 %v954_v56, %v2114_v24  ;;  %v956_v12 = vpop.f32.mrb[61].mxu1  ;;  %v1223_v54 = vpop.f32.mrb[62].mxu0 }
 0x1fc   :  { %v1293_v7 = vmax.f32 %v1727_v4, 0.0  ;;  %v1730_v62 = vadd.f32 %v956_v12, %v2118_v32  ;;  %v1225_v13 = vpop.f32.mrb[63].mxu0 }
 0x1fd   :  { %1358 = vst [vmem:[#allocation7 + $0x1d0] sm:$0xff] %v1292_v17  ;;  %v1729_v37 = vadd.f32 %v1728_v47, %v1217_v42 }
 0x1fe   :  { %1359 = vst [vmem:[#allocation7 + $0x1d8] sm:$0xff] %v1293_v7  ;;  %v1731_v25 = vadd.f32 %v1730_v62, %v1219_v46  ;;  %v960_v19 = vpop.f32.mrb[62].mxu1 }
 0x1ff   :  { %v1294_v39 = vmax.f32 %v1729_v37, 0.0  ;;  %v1732_v53 = vadd.f32 %v960_v19, %v2114_v24  ;;  %v962_v0 = vpop.f32.mrb[63].mxu1  ;;  %v1229_v1 = vpop.f32.mrb[64].mxu0 }
 0x200   :  { %v1295_v26 = vmax.f32 %v1731_v25, 0.0  ;;  %v1734_v40 = vadd.f32 %v962_v0, %v2118_v32  ;;  %v1231_v44 = vpop.f32.mrb[65].mxu0 }
 0x201   :  { %1360 = vst [vmem:[#allocation7 + $0x1e0] sm:$0xff] %v1294_v39  ;;  %v1733_v2 = vadd.f32 %v1732_v53, %v1223_v54 }
 0x202   :  { %1361 = vst [vmem:[#allocation7 + $0x1e8] sm:$0xff] %v1295_v26  ;;  %v1735_v45 = vadd.f32 %v1734_v40, %v1225_v13  ;;  %v966_v50 = vpop.f32.mrb[64].mxu1 }
 0x203   :  { %v1296_v5 = vmax.f32 %v1733_v2, 0.0  ;;  %v1736_v28 = vadd.f32 %v966_v50, %v2114_v24  ;;  %v968_v30 = vpop.f32.mrb[65].mxu1 }
 0x204   :  { %v1297_v6 = vmax.f32 %v1735_v45, 0.0  ;;  %v1738_v8 = vadd.f32 %v968_v30, %v2118_v32 }
 0x205   :  { %1362 = vst [vmem:[#allocation7 + $0x1f0] sm:$0xff] %v1296_v5  ;;  %v1737_v29 = vadd.f32 %v1736_v28, %v1229_v1 }
 0x206   :  { %1363 = vst [vmem:[#allocation7 + $0x1f8] sm:$0xff] %v1297_v6  ;;  %v1739_v48 = vadd.f32 %v1738_v8, %v1231_v44 }
 0x207   :  { %v1298_v9 = vmax.f32 %v1737_v29, 0.0 }
 0x208   :  { %v1299_v27 = vmax.f32 %v1739_v48, 0.0 }
 0x209   :  { %1364 = vst [vmem:[#allocation7 + $0x200] sm:$0xff] %v1298_v9 }
 0x20a   :  { %1365 = vst [vmem:[#allocation7 + $0x208] sm:$0xff] %v1299_v27 }
 0x20b   :  { %1868 = shalt.err (!%p1865_p6)
}
 0x20c   :  { %s1869_s17 = scalar_lea.hbm %s2230_s3, 8448 }
 0x20d   :  { %p1870_p7 = scmp.ne.s32.totalorder %s2230_s3, %s1869_s17  ;;  %p1873_p8 = scmp.lt.u32.totalorder %s1869_s17, %s2230_s3 }
 0x20f   :  { %p1875_p9 = pnand %p1873_p8, %p1870_p7 }
 0x211   :  { %1878 = shalt.err (!%p1875_p9)
}
 0x212   :  { %1377 = dma.vmem_to_hbm [thread:$0]  %s1372_s13, 8448, %s2230_s3, [#allocation4], %s1889_s0, %s1889_s0, %s1890_s9  }
 0x213   :  { %1883 = dma.done.wait [#allocation4], 8448  }
 0x214   :  { %1884 = vsyncadd [#allocation4], 4294958848 }
 0x215   :  { %1381 = vsyncpa [#allocation3], 1 }
 0x216   :  { %1382 = vsyncpa [#allocation6], 1 }
 0x217   :  { %1383 = vsyncpa [#allocation4], 1 }

</bundles_post_ra>
